<compile_context>
chip_gen: v7x
topology: tpu7x:2x2x1
jax: 0.10.0
libtpu: 0.0.40
codegen_flags: <defaults>
</compile_context>

<pallas_src>
import functools

import jax
import jax.numpy as jnp
from jax.experimental import pallas as pl
from jax.experimental.pallas import tpu as pltpu

FEATURES = 16 * 3          # 48
IN_DIM = 784 * 3           # 2352
H_DIM = 512 * 3            # 1536
LATENT2 = FEATURES * 2     # 96
TN = 512                   # output-dim tile for the big linears


# ----------------------------------------------------------------------------
# Pallas kernels
# ----------------------------------------------------------------------------
def _linear_tiled_kernel(x_ref, w_ref, b_ref, o_ref, *, activation):
    """One N-tile of  y = act(x @ W + b).  x/W bf16, accum + epilogue in f32."""
    acc = jnp.dot(x_ref[...], w_ref[...], preferred_element_type=jnp.float32)
    acc = acc + b_ref[...]                      # (1, TN) f32 broadcasts
    if activation == "relu":
        acc = jnp.maximum(acc, 0.0)
    elif activation == "sigmoid":
        acc = jax.nn.sigmoid(acc)
    o_ref[...] = acc.astype(o_ref.dtype)


def _latent_kernel(h_ref, wmu_ref, bmu_ref, wlv_ref, blv_ref,
                   eps_ref, wd1_ref, bd1_ref,
                   mu_ref, lv_ref, o_ref):
    """Fused: enc2 (split into mu / log_var heads) -> reparameterize ->
    dec1 + relu.  All operands are VMEM-resident (everything is tiny)."""
    h = h_ref[...]                                                 # (B, H) bf16
    mu = jnp.dot(h, wmu_ref[...], preferred_element_type=jnp.float32)
    mu = mu + bmu_ref[...]                                         # (B, F) f32
    lv = jnp.dot(h, wlv_ref[...], preferred_element_type=jnp.float32)
    lv = lv + blv_ref[...]                                         # (B, F) f32

    std = jnp.exp(0.5 * lv)
    z = mu + eps_ref[...] * std                                    # (B, F) f32

    hd = jnp.dot(z.astype(jnp.bfloat16), wd1_ref[...],
                 preferred_element_type=jnp.float32)
    hd = hd + bd1_ref[...]                                         # (B, H) f32

    mu_ref[...] = mu
    lv_ref[...] = lv
    o_ref[...] = jnp.maximum(hd, 0.0).astype(o_ref.dtype)


# ----------------------------------------------------------------------------
# Wrappers around pallas_call
# ----------------------------------------------------------------------------
def pallas_linear(x, w, b, *, activation="none", tn=TN, out_dtype=jnp.float32):
    """x: (B, K) bf16, w: (K, N) bf16 (pre-transposed), b: (N,) f32 -> (B, N)."""
    B, K = x.shape
    Kw, N = w.shape
    assert K == Kw
    if N % tn != 0:          # fallback: single block over N (not used here)
        tn = N
    b2 = b.reshape(1, N)
    kernel = functools.partial(_linear_tiled_kernel, activation=activation)
    return pl.pallas_call(
        kernel,
        out_shape=jax.ShapeDtypeStruct((B, N), out_dtype),
        grid=(N // tn,),
        in_specs=[
            pl.BlockSpec((B, K), lambda j: (0, 0)),   # activations, resident
            pl.BlockSpec((K, tn), lambda j: (0, j)),  # streamed weight tile
            pl.BlockSpec((1, tn), lambda j: (0, j)),  # bias tile
        ],
        out_specs=pl.BlockSpec((B, tn), lambda j: (0, j)),
        compiler_params=pltpu.CompilerParams(
            dimension_semantics=("parallel",)),
    )(x, w, b2)


def pallas_latent(h, w_mu, b_mu, w_lv, b_lv, eps, w_d1, b_d1):
    """Fused enc2 + reparameterize + dec1(relu).  h: (B, H_DIM) bf16."""
    B, K = h.shape
    F = w_mu.shape[1]
    N = w_d1.shape[1]
    return pl.pallas_call(
        _latent_kernel,
        out_shape=(
            jax.ShapeDtypeStruct((B, F), jnp.float32),    # mu
            jax.ShapeDtypeStruct((B, F), jnp.float32),    # log_var
            jax.ShapeDtypeStruct((B, N), jnp.bfloat16),   # relu(dec1(z))
        ),
        in_specs=[
            pl.BlockSpec((B, K), lambda: (0, 0)),
            pl.BlockSpec((K, F), lambda: (0, 0)),
            pl.BlockSpec((1, F), lambda: (0, 0)),
            pl.BlockSpec((K, F), lambda: (0, 0)),
            pl.BlockSpec((1, F), lambda: (0, 0)),
            pl.BlockSpec((B, F), lambda: (0, 0)),
            pl.BlockSpec((F, N), lambda: (0, 0)),
            pl.BlockSpec((1, N), lambda: (0, 0)),
        ],
        out_specs=(
            pl.BlockSpec((B, F), lambda: (0, 0)),
            pl.BlockSpec((B, F), lambda: (0, 0)),
            pl.BlockSpec((B, N), lambda: (0, 0)),
        ),
    )(h, w_mu, b_mu.reshape(1, F), w_lv, b_lv.reshape(1, F),
      eps, w_d1, b_d1.reshape(1, N))


# ----------------------------------------------------------------------------
# Parameter init (deterministic, PyTorch-nn.Linear-like uniform(-1/sqrt(in)))
# ----------------------------------------------------------------------------
def init_params(key, tn=TN):
    def linear_init(key, in_f, out_f):
        kw, kb = jax.random.split(key)
        bound = 1.0 / jnp.sqrt(in_f)
        # stored as (in, out) == W.T relative to torch's (out, in)
        w = jax.random.uniform(kw, (in_f, out_f), jnp.float32, -bound, bound)
        b = jax.random.uniform(kb, (out_f,), jnp.float32, -bound, bound)
        return w, b

    k1, k2, k3, k4 = jax.random.split(key, 4)
    w1, b1 = linear_init(k1, IN_DIM, H_DIM)
    w2, b2 = linear_init(k2, H_DIM, LATENT2)
    w3, b3 = linear_init(k3, FEATURES, H_DIM)
    w4, b4 = linear_init(k4, H_DIM, IN_DIM)

    # Pad dec2's output dim to a multiple of TN (zeros) for clean N-tiling.
    n_pad = tn * (-(-IN_DIM // tn))
    w4 = jnp.pad(w4, ((0, 0), (0, n_pad - IN_DIM)))
    b4 = jnp.pad(b4, (0, n_pad - IN_DIM))

    bf16 = jnp.bfloat16
    return {
        "enc1": (w1.astype(bf16), b1),
        "enc2_mu": (w2[:, :FEATURES].astype(bf16), b2[:FEATURES]),
        "enc2_lv": (w2[:, FEATURES:].astype(bf16), b2[FEATURES:]),
        "dec1": (w3.astype(bf16), b3),
        "dec2": (w4.astype(bf16), b4),
    }


# ----------------------------------------------------------------------------
# Forward pass (mirrors LinearVAE.forward)
# ----------------------------------------------------------------------------
def linear_vae_forward(params, x, eps):
    # enc1 + relu  (bf16 activations out; accumulation/epilogue were f32)
    h1 = pallas_linear(x.astype(jnp.bfloat16), *params["enc1"],
                       activation="relu", out_dtype=jnp.bfloat16)
    # fused: enc2 -> (mu, log_var) -> z = mu + eps*exp(0.5*log_var) -> dec1+relu
    mu, log_var, h2 = pallas_latent(
        h1, *params["enc2_mu"], *params["enc2_lv"], eps, *params["dec1"])
    # dec2 + sigmoid (output dim padded to 2560; slice back to 2352)
    recon_pad = pallas_linear(h2, *params["dec2"],
                              activation="sigmoid", out_dtype=jnp.float32)
    reconstruction = recon_pad[:, :IN_DIM]
    return reconstruction, mu, log_var


# Plain-JAX reference (same bf16 weights / rounding) for a sanity check.
def reference_forward(params, x, eps):
    bf16, f32 = jnp.bfloat16, jnp.float32
    w1, b1 = params["enc1"]
    wmu, bmu = params["enc2_mu"]
    wlv, blv = params["enc2_lv"]
    w3, b3 = params["dec1"]
    w4, b4 = params["dec2"]
    h = jnp.maximum(
        jnp.dot(x.astype(bf16), w1, preferred_element_type=f32) + b1, 0.0)
    h = h.astype(bf16)
    mu = jnp.dot(h, wmu, preferred_element_type=f32) + bmu
    lv = jnp.dot(h, wlv, preferred_element_type=f32) + blv
    z = mu + eps * jnp.exp(0.5 * lv)
    hd = jnp.maximum(
        jnp.dot(z.astype(bf16), w3, preferred_element_type=f32) + b3, 0.0)
    hd = hd.astype(bf16)
    rec = jax.nn.sigmoid(jnp.dot(hd, w4, preferred_element_type=f32) + b4)
    return rec[:, :IN_DIM], mu, lv


# ----------------------------------------------------------------------------
if __name__ == "__main__":
    key = jax.random.PRNGKey(0)
    pkey, xkey, ekey = jax.random.split(key, 3)

    params = init_params(pkey)

    batch = 4
    x = jax.random.uniform(xkey, (batch, IN_DIM), jnp.float32)
    eps = jax.random.normal(ekey, (batch, FEATURES), jnp.float32)

    recon, mu, log_var = linear_vae_forward(params, x, eps)
    jax.block_until_ready((recon, mu, log_var))

    assert recon.shape == (batch, IN_DIM)
    assert mu.shape == (batch, FEATURES)
    assert log_var.shape == (batch, FEATURES)
    assert recon.dtype == jnp.float32

    # Loose-tolerance sanity check against a plain-JAX bf16 reference.
    r_rec, r_mu, r_lv = reference_forward(params, x, eps)
    assert jnp.allclose(recon, r_rec, atol=5e-2, rtol=5e-2)
    assert jnp.allclose(mu, r_mu, atol=5e-2, rtol=5e-2)
    assert jnp.allclose(log_var, r_lv, atol=5e-2, rtol=5e-2)

    print("KERNEL_OK")
</pallas_src>

<mosaic_0001>
module attributes {stable_mosaic.version = 11 : i64} {
  func.func @_linear_tiled_kernel(%arg0: i32, %arg1: memref<4x2352xbf16, #tpu.memory_space<vmem>>, %arg2: memref<2352x512xbf16, #tpu.memory_space<vmem>>, %arg3: memref<1x512xf32, #tpu.memory_space<vmem>>, %arg4: memref<4x512xbf16, #tpu.memory_space<vmem>>) attributes {dimension_semantics = [#tpu.dimension_semantics<parallel>], iteration_bounds = array<i64: 3>, scalar_prefetch = 0 : i64, scratch_operands = 0 : i64, tpu.core_type = #tpu.core_type<tc>, window_params = [{pipeline_mode = #tpu.pipeline_mode<synchronous>, transform_indices = @transform_0, window_bounds = array<i64: 4, 2352>}, {transform_indices = @transform_1, window_bounds = array<i64: 2352, 512>}, {transform_indices = @transform_2, window_bounds = array<i64: 1, 512>}, {transform_indices = @transform_3, window_bounds = array<i64: 4, 512>}]} {
    %c0 = arith.constant 0 : index
    %c0_0 = arith.constant 0 : index
    %0 = vector.load %arg1[%c0, %c0_0] : memref<4x2352xbf16, #tpu.memory_space<vmem>>, vector<4x2352xbf16>
    %c0_1 = arith.constant 0 : index
    %c0_2 = arith.constant 0 : index
    %1 = vector.load %arg2[%c0_1, %c0_2] : memref<2352x512xbf16, #tpu.memory_space<vmem>>, vector<2352x512xbf16>
    %cst = arith.constant dense<0.000000e+00> : vector<4x512xf32>
    %2 = tpu.matmul %0, %1, %cst {dimension_numbers = #tpu.dot_dimension_numbers<[1], [0], [0], [1], [0, 0, 1, 1], [], []>} : vector<4x2352xbf16>, vector<2352x512xbf16>, vector<4x512xf32> -> vector<4x512xf32>
    %c0_3 = arith.constant 0 : index
    %c0_4 = arith.constant 0 : index
    %3 = vector.load %arg3[%c0_3, %c0_4] : memref<1x512xf32, #tpu.memory_space<vmem>>, vector<1x512xf32>
    %4 = vector.broadcast %3 : vector<1x512xf32> to vector<4x512xf32>
    %5 = arith.addf %2, %4 : vector<4x512xf32>
    %cst_5 = arith.constant 0.000000e+00 : f32
    %6 = vector.broadcast %cst_5 : f32 to vector<4x512xf32>
    %7 = arith.maximumf %5, %6 : vector<4x512xf32>
    %8 = arith.truncf %7 : vector<4x512xf32> to vector<4x512xbf16>
    %c0_6 = arith.constant 0 : index
    %c0_7 = arith.constant 0 : index
    %9 = vector.load %arg4[%c0_6, %c0_7] : memref<4x512xbf16, #tpu.memory_space<vmem>>, vector<4x512xbf16>
    tpu.vector_store %arg4[%c0_6, %c0_7], %8 {strides = array<i32>} : memref<4x512xbf16, #tpu.memory_space<vmem>>, vector<4x512xbf16>,
    return
  }
  func.func @transform_0(%arg0: i32) -> (i32, i32) {
    %c0_i32 = arith.constant 0 : i32
    %c0_i32_0 = arith.constant 0 : i32
    %c0_i32_1 = arith.constant 0 : i32
    return %c0_i32, %c0_i32_0 : i32, i32
  }
  func.func @transform_1(%arg0: i32) -> (i32, i32) {
    %c0_i32 = arith.constant 0 : i32
    %c0_i32_0 = arith.constant 0 : i32
    return %c0_i32, %arg0 : i32, i32
  }
  func.func @transform_2(%arg0: i32) -> (i32, i32) {
    %c0_i32 = arith.constant 0 : i32
    %c0_i32_0 = arith.constant 0 : i32
    return %c0_i32, %arg0 : i32, i32
  }
  func.func @transform_3(%arg0: i32) -> (i32, i32) {
    %c0_i32 = arith.constant 0 : i32
    %c0_i32_0 = arith.constant 0 : i32
    return %c0_i32, %arg0 : i32, i32
  }
}

</mosaic_0001>

<bundles_post_ra>
// kernel: tpu_custom_call.1
= control target key start
LH: loop header
LB: loop body
LE: loop exit
PB: predicated region body
PF: predicated region fallthrough
CT: control target
= control target key end

     0   :  { %8 = vsyncpa [#allocation3], 0  ;;  %s7621_s0 = inlined_call_operand.hbm [shape: bf16[4,2352], index: 0, kind: input, shape index: {}]   ;;  %s7622_s1 = inlined_call_operand.hbm [shape: bf16[2352,1536], index: 1, kind: input, shape index: {}]   ;;  %s7623_s2 = inlined_call_operand.hbm [shape: f32[1,1536], index: 2, kind: input, shape index: {}]   ;;  %s7624_s3 = inlined_call_operand.hbm [shape: bf16[4,1536], index: 3, kind: output, shape index: {}]  }
   0x1   :  { %9 = vsyncpa [#allocation6], 0 }
   0x2   :  { %11 = vsyncpa [#allocation6 + $0x1], 0 }
   0x3   :  { %12 = vsyncpa [#allocation4], 0 }
   0x4   :  { %14 = vsyncpa [#allocation4 + $0x1], 0  ;;  %s6709_s12 = smov 0   ;;  %s6711_s13 = smov 0  }
   0x5   :  { %s6713_s14 = smov 0   ;;  %s6715_s15 = smov 0  }
   0x6 LB: > { %s6730_s16 = sadd.s32 1, %s6678_s15   ;;  %s48_s17 = sadd.s32 1, %s6674_s14  ;;  %s6678_s15 = sphi %s6715_s15, %s7650_s15   ;;  %s6674_s14 = sphi %s6713_s14, %s7649_s14   ;;  %s6670_s13 = sphi %s6711_s13, %s7648_s13   ;;  %s6666_s12 = sphi %s6709_s12, %s7647_s12  }
   0x7   : > { %s45_s18 = ssub.s32 %s6678_s15, %s6730_s16  ;;  %p55_p0 = scmp.ne.s32.totalorder %s6674_s14, %s6670_s13 }
   0x8   : > { %p46_p1 = scmp.eq.s32.totalorder %s45_s18, 0  ;;  %p56_p2 = scmp.eq.s32.totalorder %s6678_s15, 0 }
   0x9   : > { %p5592_p3 = scmp.lt.s32.totalorder %s6678_s15, 3  ;;  %s148_s20 = sand.u32 1, %s6678_s15  }
   0xa   : > { %s6740_s19 = scalar_select %p46_p1, %s6674_s14, %s48_s17  }
   0xb   : > { %p57_p4 = por %p56_p2, %p55_p0  ;;  %s150_s21 = sand.u32 1, %s6674_s14  }
   0xc   : > { %s5564_s22 = smul.u32 4704, %s150_s21  ;;  %s5485_s23 = sshll.u32 %s6678_s15, 8 }
   0xd   : > { %s6753_s26 = scalar_lea.hbm %s7622_s1, %s5485_s23  ;;  %p6755_p5 = pnand %p5592_p3, %p57_p4 }
   0xe   : > { %s152_s28 = scalar_lea.vmem [#allocation5], %s5564_s22  ;;  %s6761_s30 = scalar_lea.sflag [#allocation6], %s148_s20 }
   0xf   : > { %s7632_s27 = scalar_select %p6755_p5, 1, 0 }
  0x10   : > { %s159_s29 = sshll.u32 %s152_s28, 4  ;;  %s6520_s4 = scalar_lea.hbm %s6753_s26, 75264  ;;  %s6759_s29 = int_to_ptr.vmem [resolvable:$true] %s159_s29 }
  0x11   : > { %p6521_p6 = scmp.ne.s32.totalorder %s6753_s26, %s6520_s4  ;;  %p7626_p7 = pneg %p6755_p5 }
  0x12   : > { %s6525_s7 = scalar_lea.hbm %s7622_s1, 225792  ;;  %p6526_p10 = scmp.lt.u32.totalorder %s6753_s26, %s7622_s1 }
  0x13   : > { %p6523_p8 = pnand %p7626_p7, %p6521_p6  ;;  %p6527_p11 = scmp.lt.u32.totalorder %s6525_s7, %s6520_s4 }
  0x14   : > { %p6529_p13 = scmp.lt.u32.totalorder %s6520_s4, %s6753_s26 }
  0x15   : > { %p6524_p9 = pneg %p6523_p8  ;;  %p6528_p12 = por %p6527_p11, %p6526_p10 }
  0x17   : > { %p6530_p1 = por %p6529_p13, %p6528_p12 }
  0x19   : > { %p6531_p2 = pnand %p6530_p1, %p6524_p9 }
  0x1b   : > { %6534 = shalt.err (!%p6531_p2)
}
  0x1c   : > { %s6535_s10 = scalar_lea.vmem %s6759_s29, 75264  ;;  %s6680_s11 = smov [#allocation5]  }
  0x1d   : > { %p6536_p3 = scmp.ne.s32.totalorder %s6759_s29, %s6535_s10  ;;  %s6540_s17 = sshll.u32 %s6680_s11, 4  ;;  %s6541_s17 = int_to_ptr.vmem [resolvable:$false] %s6540_s17 }
  0x1e   : > { %s6542_s18 = scalar_lea.vmem %s6541_s17, 150528  ;;  %p6543_p8 = scmp.lt.s32.totalorder %s6759_s29, %s6541_s17 }
  0x1f   : > { %p6538_p4 = pnand %p6536_p3, %p7626_p7  ;;  %p6544_p10 = scmp.lt.s32.totalorder %s6542_s18, %s6535_s10 }
  0x21   : > { %p6539_p6 = pneg %p6538_p4  ;;  %p6545_p11 = por %p6544_p10, %p6543_p8 }
  0x23   : > { %p6546_p12 = pnand %p6545_p11, %p6539_p6 }
  0x25   : > { %6549 = shalt.err (!%p6546_p12)
}
  0x26   : > { %s6681_s20 = smov 768   ;;  %s6682_s22 = smov 256  }
  0x27   : > { %s6683_s23 = smov 16   ;;  %s6790_s24 = sadd.s32 4294967295, %s6678_s15  }
  0x28   : > { %5583 = dma.hbm_to_vmem [thread:$0]  (!%p6755_p5), %s6753_s26, 75264, %s6759_s29, %s6761_s30, %s6681_s20, %s6682_s22, %s6683_s23  }
  0x29   : > { %s4875_s25 = sadd.s32 4294967294, %s6678_s15   ;;  %p61_p9 = scmp.ne.s32.totalorder %s6670_s13, %s6666_s12 }
  0x2a   : > { %p7625_p13 = scmp.eq.s32.totalorder %s6790_s24, 0  ;;  %p111_p1 = scmp.eq.s32.totalorder %s6790_s24, 2 }
  0x2b   : > { %p117_p2 = scmp.eq.s32.totalorder %s4875_s25, 2  ;;  %p4876_p3 = scmp.ge.s32.totalorder %s6678_s15, 1 }
  0x2c   : > { %p6800_p4 = por %p7625_p13, %p61_p9  ;;  %p6807_p6 = por %p111_p1, %p55_p0 }
  0x2d   : > { %p6811_p8 = por %p117_p2, %p61_p9  ;;  %p124_p10 = scmp.lt.s32.totalorder %s6678_s15, 4 }
  0x2e   : > { %s7633_s28 = scalar_select %p6800_p4, 1, 0 }
  0x2f   : > { %s7634_s26 = scalar_select %p6807_p6, 1, 0 }
  0x30   : > { %s7635_s29 = scalar_select %p6811_p8, 1, 0 }
  0x31   : > { %p6816_p11 = pnand %p4876_p3, %p124_p10  ;;  %s6684_s5 = smov [#allocation2]  }
  0x32   : > { %s137_s6 = sshll.u32 %s6684_s5, 4  ;;  %s4881_s7 = sshll.u32 %s150_s21, 2  ;;  %s138_s6 = int_to_ptr.vmem [resolvable:$true] %s137_s6 }
  0x33   : > { %s7636_s4 = scalar_select %p6816_p11, 1, 0 }
  0x34   : > { %p5576_p12 = pneg %p6816_p11  ;;  %s5486_s8 = sshll.u32 %s6678_s15, 6 }
  0x35   : > { %s173_s9 = scalar_lea.vmem [#allocation7], %s4881_s7  ;;  %s6834_s20 = scalar_lea.hbm %s7623_s2, %s5486_s8 }
  0x36   : > { %s181_s10 = sshll.u32 %s173_s9, 4  ;;  %p6827_p0 = pnand %p5576_p12, %p7625_p13  ;;  %s6836_s10 = int_to_ptr.vmem [resolvable:$true] %s181_s10 }
  0x37   : > { %s6550_s23 = scalar_lea.hbm %s7621_s0, 608 }
  0x38   : > { %p6551_p9 = scmp.ne.s32.totalorder %s7621_s0, %s6550_s23  ;;  %p6552_p1 = pneg %p6827_p0 }
  0x39   : > { %p6557_p10 = scmp.lt.u32.totalorder %s6550_s23, %s7621_s0 }
  0x3a   : > { %p6553_p2 = pnand %p6552_p1, %p6551_p9 }
  0x3c   : > { %p6554_p3 = pneg %p6553_p2 }
  0x3e   : > { %p6559_p12 = pnand %p6557_p10, %p6554_p3 }
  0x40   : > { %6562 = shalt.err (!%p6559_p12)
}
  0x41   : > { %s6563_s8 = scalar_lea.vmem %s138_s6, 608  ;;  %p6571_p6 = scmp.lt.s32.totalorder %s138_s6, %s138_s6 }
  0x42   : > { %p6564_p13 = scmp.ne.s32.totalorder %s138_s6, %s6563_s8  ;;  %p6572_p4 = scmp.lt.s32.totalorder %s6563_s8, %s6563_s8 }
  0x44   : > { %p6566_p7 = pnand %p6564_p13, %p6552_p1  ;;  %p6573_p11 = por %p6572_p4, %p6571_p6 }
  0x46   : > { %p6567_p8 = pneg %p6566_p7 }
  0x48   : > { %p6574_p5 = pnand %p6573_p11, %p6567_p8 }
  0x4a   : > { %6577 = shalt.err (!%p6574_p5)
}
  0x4b   : > { %5579 = dma.hbm_to_vmem [thread:$0]  (!%p6827_p0), %s7621_s0, 608, %s138_s6, [#allocation3]  }
  0x4c   : > { %s6578_s21 = scalar_lea.hbm %s6834_s20, 64  ;;  %p7638_p13 = scmp.ne.s32.totalorder %s7632_s27, 0 }
  0x4d   : > { %p6579_p9 = scmp.ne.s32.totalorder %s6834_s20, %s6578_s21  ;;  %s6583_s25 = scalar_lea.hbm %s7623_s2, 192 }
  0x4e   : > { %p7639_p7 = pneg %p7638_p13  ;;  %p6584_p5 = scmp.lt.u32.totalorder %s6834_s20, %s7623_s2 }
  0x4f   : > { %p6585_p4 = scmp.lt.u32.totalorder %s6583_s25, %s6578_s21  ;;  %p6587_p8 = scmp.lt.u32.totalorder %s6578_s21, %s6834_s20 }
  0x50   : > { %p6581_p1 = pnand %p6579_p9, %p7639_p7 }
  0x51   : > { %p6586_p6 = por %p6585_p4, %p6584_p5 }
  0x52   : > { %p6582_p2 = pneg %p6581_p1 }
  0x53   : > { %p6588_p11 = por %p6587_p8, %p6586_p6 }
  0x55   : > { %p6589_p3 = pnand %p6588_p11, %p6582_p2 }
  0x57   : > { %6592 = shalt.err (!%p6589_p3)
}
  0x58   : > { %s6593_s6 = scalar_lea.vmem %s6836_s10, 64  ;;  %p7640_p10 = pmov %p7639_p7 }
  0x59   : > { %p6594_p0 = scmp.ne.s32.totalorder %s6836_s10, %s6593_s6  ;;  %s6685_s7 = smov [#allocation7]  }
  0x5a   : > { %s6598_s9 = sshll.u32 %s6685_s7, 4  ;;  %s6599_s9 = int_to_ptr.vmem [resolvable:$false] %s6598_s9 }
  0x5b   : > { %p6596_p12 = pnand %p6594_p0, %p7640_p10  ;;  %s6600_s8 = scalar_lea.vmem %s6599_s9, 128 }
  0x5c   : > { %p6601_p7 = scmp.lt.s32.totalorder %s6836_s10, %s6599_s9  ;;  %p6602_p1 = scmp.lt.s32.totalorder %s6600_s8, %s6593_s6 }
  0x5d   : > { %p6597_p9 = pneg %p6596_p12 }
  0x5e   : > { %p6603_p5 = por %p6602_p1, %p6601_p7 }
  0x60   : > { %p6604_p4 = pnand %p6603_p5, %p6597_p9 }
  0x62   : > { %6607 = shalt.err (!%p6604_p4)
}
  0x63   : > { %5586 = dma.hbm_to_vmem [thread:$0]  (!%p7638_p13), %s6834_s20, 64, %s6836_s10, %s6761_s30  }
  0x64   : > { %p7641_p2 = scmp.ne.s32.totalorder %s7636_s4, 0 }
  0x65   : > { %p7642_p6 = scmp.eq.s32.totalorder (!%p7641_p2), %s6790_s24, 0 }
  0x66   : > { %190 = sbr.rel (%p7641_p2) target bundleno = 941 (0x3ad), region = 32 }
  0x6d   : > { %6653 = dma.done.wait (%p7642_p6), [#allocation3], 608   ;;  %p7643_p8 = pmov %p7642_p6 }
  0x6e   : > { %s196_s17 = sand.u32 1, %s6790_s24   ;;  %s6886_s18 = sand.u32 1, %s6670_s13  }
  0x6f   : > { %6655 = vsyncadd (%p7643_p8), [#allocation3], 4294966688  ;;  %s5565_s27 = smul.u32 4704, %s6886_s18  ;;  %s197_s21 = scalar_lea.sflag [#allocation6], %s196_s17 }
  0x70   : > { %p7644_p13 = scmp.ne.s32.totalorder %s7633_s28, 0 }
  0x71   : > { %s6889_s22 = scalar_lea.vmem [#allocation5], %s5565_s27 }
  0x72   : > { %6657 = dma.done.wait (%p7644_p13), %s197_s21, 75328  }
  0x73   : > { %6659 = vsyncadd (%p7644_p13), %s197_s21, 4294891968  ;;  %v5633_v0 = vld [vmem:[%s6889_s22 + $0x4] ss:$16 sps:$4 sm:$0xff]   ;;  %v5635_v1 = vld [vmem:[%s6889_s22 + $0xc] ss:$16 sps:$4 sm:$0xff]   ;;  %v836_v36 = vlaneseq  ;;  %vm3903_vm0 = vcmask 392192  }
  0x74   : > { %3907 = vmatprep.subr.bf16.mxu0 %v5633_v0  ;;  %v5637_v2 = vld [vmem:[%s6889_s22] ss:$16 sps:$4 sm:$0xff]   ;;  %v5638_v3 = vld [vmem:[%s6889_s22 + $0x8] ss:$16 sps:$4 sm:$0xff]   ;;  %4317 = vmatprep.subr.bf16.mxu1 %v5635_v1  ;;  %v5639_v4 = vld [vmem:[%s6889_s22 + $0x24] ss:$16 sps:$4 sm:$0xff]  }
  0x75   : > { %3908 = vmatpush1.bf16.msra.mxu0 %v5637_v2  ;;  %4318 = vmatpush1.bf16.msra.mxu1 %v5638_v3  ;;  %v5641_v5 = vld [vmem:[%s6889_s22 + $0x2c] ss:$16 sps:$4 sm:$0xff]   ;;  %v5643_v6 = vld [vmem:[%s6889_s22 + $0x20] ss:$16 sps:$4 sm:$0xff]   ;;  %v5644_v7 = vld [vmem:[%s6889_s22 + $0x28] ss:$16 sps:$4 sm:$0xff]  }
  0x76   : > { %3909 = vmatprep.subr.bf16.mxu0 %v5639_v4  ;;  %4319 = vmatprep.subr.bf16.mxu1 %v5641_v5  ;;  %v5645_v8 = vld [vmem:[%s6889_s22 + $0x44] ss:$16 sps:$4 sm:$0xff]   ;;  %v5647_v9 = vld [vmem:[%s6889_s22 + $0x4c] ss:$16 sps:$4 sm:$0xff]   ;;  %v5649_v10 = vld [vmem:[%s6889_s22 + $0x40] ss:$16 sps:$4 sm:$0xff]  }
  0x77   : > { %v5650_v11 = vld [vmem:[%s6889_s22 + $0x48] ss:$16 sps:$4 sm:$0xff]   ;;  %v5651_v12 = vld [vmem:[%s6889_s22 + $0x64] ss:$16 sps:$4 sm:$0xff]   ;;  %v5653_v13 = vld [vmem:[%s6889_s22 + $0x6c] ss:$16 sps:$4 sm:$0xff]  }
  0x78   : > { %v5655_v14 = vld [vmem:[%s6889_s22 + $0x60] ss:$16 sps:$4 sm:$0xff]   ;;  %v5656_v15 = vld [vmem:[%s6889_s22 + $0x68] ss:$16 sps:$4 sm:$0xff]   ;;  %v5657_v16 = vld [vmem:[%s6889_s22 + $0x84] ss:$16 sps:$4 sm:$0xff]  }
  0x79   : > { %3910 = vmatpush1.bf16.msra.mxu0 %v5643_v6  ;;  %4320 = vmatpush1.bf16.msra.mxu1 %v5644_v7  ;;  %v5659_v17 = vld [vmem:[%s6889_s22 + $0x8c] ss:$16 sps:$4 sm:$0xff]   ;;  %v5661_v18 = vld [vmem:[%s6889_s22 + $0x80] ss:$16 sps:$4 sm:$0xff]   ;;  %v5662_v19 = vld [vmem:[%s6889_s22 + $0x88] ss:$16 sps:$4 sm:$0xff]  }
  0x7a   : > { %3911 = vmatprep.subr.bf16.mxu0 %v5645_v8  ;;  %4321 = vmatprep.subr.bf16.mxu1 %v5647_v9  ;;  %v5663_v20 = vld [vmem:[%s6889_s22 + $0xa4] ss:$16 sps:$4 sm:$0xff]   ;;  %v5665_v21 = vld [vmem:[%s6889_s22 + $0xac] ss:$16 sps:$4 sm:$0xff]   ;;  %v5667_v22 = vld [vmem:[%s6889_s22 + $0xa0] ss:$16 sps:$4 sm:$0xff]  }
  0x7b   : > { %v5668_v23 = vld [vmem:[%s6889_s22 + $0xa8] ss:$16 sps:$4 sm:$0xff]   ;;  %v5669_v24 = vld [vmem:[%s6889_s22 + $0xc4] ss:$16 sps:$4 sm:$0xff]   ;;  %v5671_v25 = vld [vmem:[%s6889_s22 + $0xcc] ss:$16 sps:$4 sm:$0xff]  }
  0x7c   : > { %v5673_v26 = vld [vmem:[%s6889_s22 + $0xc0] ss:$16 sps:$4 sm:$0xff]   ;;  %v5674_v27 = vld [vmem:[%s6889_s22 + $0xc8] ss:$16 sps:$4 sm:$0xff]   ;;  %v5675_v28 = vld [vmem:[%s6889_s22 + $0xe4] ss:$16 sps:$4 sm:$0xff]  }
  0x7d   : > { %3912 = vmatpush1.bf16.msra.mxu0 %v5649_v10  ;;  %4322 = vmatpush1.bf16.msra.mxu1 %v5650_v11  ;;  %v5677_v29 = vld [vmem:[%s6889_s22 + $0xec] ss:$16 sps:$4 sm:$0xff]   ;;  %v5679_v30 = vld [vmem:[%s6889_s22 + $0xe0] ss:$16 sps:$4 sm:$0xff]   ;;  %v5680_v31 = vld [vmem:[%s6889_s22 + $0xe8] ss:$16 sps:$4 sm:$0xff]  }
  0x7e   : > { %3913 = vmatprep.subr.bf16.mxu0 %v5651_v12  ;;  %4323 = vmatprep.subr.bf16.mxu1 %v5653_v13  ;;  %v5681_v32 = vld [vmem:[%s6889_s22 + $0x104] ss:$16 sps:$4 sm:$0xff]   ;;  %v5683_v33 = vld [vmem:[%s6889_s22 + $0x10c] ss:$16 sps:$4 sm:$0xff]   ;;  %v5685_v34 = vld [vmem:[%s6889_s22 + $0x100] ss:$16 sps:$4 sm:$0xff]  }
  0x7f   : > { %v5686_v35 = vld [vmem:[%s6889_s22 + $0x108] ss:$16 sps:$4 sm:$0xff]   ;;  %v6686_v37 = vmov 1983009808   ;;  %v5687_v39 = vld [vmem:[%s6889_s22 + $0x124] ss:$16 sps:$4 sm:$0xff]  }
  0x80   : > { %v863_v38 = vunpack.c.l.s4 %v6686_v37  ;;  %v5689_v40 = vld [vmem:[%s6889_s22 + $0x12c] ss:$16 sps:$4 sm:$0xff]   ;;  %v5691_v41 = vld [vmem:[%s6889_s22 + $0x120] ss:$16 sps:$4 sm:$0xff]   ;;  %v6934_v42 = vshrl.u32 %v836_v36, 7  ;;  %s4886_s30 = sshll.u32 %s6886_s18, 2 }
  0x81   : > { %3914 = vmatpush1.bf16.msra.mxu0 %v5655_v14  ;;  %4324 = vmatpush1.bf16.msra.mxu1 %v5656_v15  ;;  %v5692_v44 = vld [vmem:[%s6889_s22 + $0x128] ss:$16 sps:$4 sm:$0xff]   ;;  %v5693_v45 = vld [vmem:[%s6889_s22 + $0x144] ss:$16 sps:$4 sm:$0xff]   ;;  %v5695_v46 = vld [vmem:[%s6889_s22 + $0x14c] ss:$16 sps:$4 sm:$0xff]  }
  0x82   : > { %3915 = vmatprep.subr.bf16.mxu0 %v5657_v16  ;;  %4325 = vmatprep.subr.bf16.mxu1 %v5659_v17  ;;  %v864_v43 = vunpack.c.0.s8 %v863_v38  ;;  %v5697_v47 = vld [vmem:[%s6889_s22 + $0x140] ss:$16 sps:$4 sm:$0xff]   ;;  %v5698_v48 = vld [vmem:[%s6889_s22 + $0x148] ss:$16 sps:$4 sm:$0xff]   ;;  %v5699_v50 = vld [vmem:[%s6889_s22 + $0x164] ss:$16 sps:$4 sm:$0xff]  }
  0x83   : > { %v5701_v51 = vld [vmem:[%s6889_s22 + $0x16c] ss:$16 sps:$4 sm:$0xff]   ;;  %v5703_v53 = vld [vmem:[%s6889_s22 + $0x160] ss:$16 sps:$4 sm:$0xff]   ;;  %v5704_v55 = vld [vmem:[%s6889_s22 + $0x168] ss:$16 sps:$4 sm:$0xff]  }
  0x84   : > { %v6942_v49 = vsub.s32 %v864_v43, %v6934_v42  ;;  %v241_v52 = vld [vmem:[#allocation2] sm:$0xff]  ;;  %v5705_v56 = vld [vmem:[%s6889_s22 + $0x184] ss:$16 sps:$4 sm:$0xff]   ;;  %s209_s28 = scalar_lea.vmem [#allocation7], %s4886_s30  ;;  %s4887_s4 = sshll.u32 %s6886_s18, 3 }
  0x85   : > { %3916 = vmatpush1.bf16.msra.mxu0 %v5661_v18  ;;  %4326 = vmatpush1.bf16.msra.mxu1 %v5662_v19  ;;  %v5707_v57 = vld [vmem:[%s6889_s22 + $0x18c] ss:$16 sps:$4 sm:$0xff]   ;;  %v5709_v59 = vld [vmem:[%s6889_s22 + $0x180] ss:$16 sps:$4 sm:$0xff]   ;;  %v5710_v60 = vld [vmem:[%s6889_s22 + $0x188] ss:$16 sps:$4 sm:$0xff]   ;;  %v861_v7 = vcombine.high %v241_v52, %v241_v52 }
  0x86   : > { %3917 = vmatprep.subr.bf16.mxu0 %v5663_v20  ;;  %4327 = vmatprep.subr.bf16.mxu1 %v5665_v21  ;;  %v868_v54 = vrot.slane %v241_v52, %v6942_v49  ;;  %v5711_v61 = vld [vmem:[%s6889_s22 + $0x1a4] ss:$16 sps:$4 sm:$0xff]   ;;  %v5713_v62 = vld [vmem:[%s6889_s22 + $0x1ac] ss:$16 sps:$4 sm:$0xff]   ;;  %v5715_v63 = vld [vmem:[%s6889_s22 + $0x1a0] ss:$16 sps:$4 sm:$0xff]  }
  0x87   : > { %v5716_v0 = vld [vmem:[%s6889_s22 + $0x1a8] ss:$16 sps:$4 sm:$0xff]   ;;  %v5717_v1 = vld [vmem:[%s6889_s22 + $0x1c4] ss:$16 sps:$4 sm:$0xff]   ;;  %v5719_v2 = vld [vmem:[%s6889_s22 + $0x1cc] ss:$16 sps:$4 sm:$0xff]   ;;  %v6968_v12 = vrot.slane %v861_v7, %v6942_v49 }
  0x88   : > { %v876_v58 = vcombine.high %v868_v54, %v868_v54  ;;  %v5721_v3 = vld [vmem:[%s6889_s22 + $0x1c0] ss:$16 sps:$4 sm:$0xff]   ;;  %v5722_v4 = vld [vmem:[%s6889_s22 + $0x1c8] ss:$16 sps:$4 sm:$0xff]   ;;  %v5723_v5 = vld [vmem:[%s6889_s22 + $0x1e4] ss:$16 sps:$4 sm:$0xff]  }
  0x89   : > { %3918 = vmatpush1.bf16.msra.mxu0 %v5667_v22  ;;  %4328 = vmatpush1.bf16.msra.mxu1 %v5668_v23  ;;  %v5725_v6 = vld [vmem:[%s6889_s22 + $0x1ec] ss:$16 sps:$4 sm:$0xff]   ;;  %v5727_v8 = vld [vmem:[%s6889_s22 + $0x1e0] ss:$16 sps:$4 sm:$0xff]   ;;  %v5728_v9 = vld [vmem:[%s6889_s22 + $0x1e8] ss:$16 sps:$4 sm:$0xff]   ;;  %v877_v17 = vcombine.high %v6968_v12, %v6968_v12 }
  0x8a   : > { %3919 = vmatprep.subr.bf16.mxu0 %v5669_v24  ;;  %4329 = vmatprep.subr.bf16.mxu1 %v5671_v25  ;;  %v5732_v10 = vld [vmem:[%s6889_s22 + $0x204] ss:$16 sps:$4 sm:$0xff]   ;;  %v5735_v11 = vld [vmem:[%s6889_s22 + $0x20c] ss:$16 sps:$4 sm:$0xff]   ;;  %v5730_v13 = vld [vmem:[%s6889_s22 + $0x200] ss:$16 sps:$4 sm:$0xff]  }
  0x8b   : > { %3939 = vmatprep.mubr.bf16.mxu0 %v876_v58  ;;  %4349 = vmatprep.mubr.bf16.mxu1 %v876_v58  ;;  %v5733_v14 = vld [vmem:[%s6889_s22 + $0x208] ss:$16 sps:$4 sm:$0xff]   ;;  %v5738_v15 = vld [vmem:[%s6889_s22 + $0x224] ss:$16 sps:$4 sm:$0xff]   ;;  %v5741_v16 = vld [vmem:[%s6889_s22 + $0x22c] ss:$16 sps:$4 sm:$0xff]  }
  0x8c   : > { %v5736_v18 = vld [vmem:[%s6889_s22 + $0x220] ss:$16 sps:$4 sm:$0xff]   ;;  %v5739_v19 = vld [vmem:[%s6889_s22 + $0x228] ss:$16 sps:$4 sm:$0xff]   ;;  %v5744_v20 = vld [vmem:[%s6889_s22 + $0x244] ss:$16 sps:$4 sm:$0xff]  }
  0x8d   : > { %3920 = vmatpush1.bf16.msra.mxu0 %v5673_v26  ;;  %4330 = vmatpush1.bf16.msra.mxu1 %v5674_v27  ;;  %v5747_v21 = vld [vmem:[%s6889_s22 + $0x24c] ss:$16 sps:$4 sm:$0xff]   ;;  %v5742_v22 = vld [vmem:[%s6889_s22 + $0x240] ss:$16 sps:$4 sm:$0xff]   ;;  %v5745_v23 = vld [vmem:[%s6889_s22 + $0x248] ss:$16 sps:$4 sm:$0xff]  }
  0x8e   : > { %3921 = vmatprep.subr.bf16.mxu0 %v5675_v28  ;;  %4331 = vmatprep.subr.bf16.mxu1 %v5677_v29  ;;  %v5750_v24 = vld [vmem:[%s6889_s22 + $0x264] ss:$16 sps:$4 sm:$0xff]   ;;  %v5753_v25 = vld [vmem:[%s6889_s22 + $0x26c] ss:$16 sps:$4 sm:$0xff]   ;;  %v5748_v26 = vld [vmem:[%s6889_s22 + $0x260] ss:$16 sps:$4 sm:$0xff]  }
  0x8f   : > { %v5751_v27 = vld [vmem:[%s6889_s22 + $0x268] ss:$16 sps:$4 sm:$0xff]   ;;  %v5756_v28 = vld [vmem:[%s6889_s22 + $0x284] ss:$16 sps:$4 sm:$0xff]   ;;  %v5759_v29 = vld [vmem:[%s6889_s22 + $0x28c] ss:$16 sps:$4 sm:$0xff]  }
  0x90   : > { %v5768_v36 = vld [vmem:[%s6889_s22 + $0x2c4] ss:$16 sps:$4 sm:$0xff]   ;;  %v5771_v37 = vld [vmem:[%s6889_s22 + $0x2cc] ss:$16 sps:$4 sm:$0xff]   ;;  %v5766_v38 = vld [vmem:[%s6889_s22 + $0x2c0] ss:$16 sps:$4 sm:$0xff]  }
  0x91   : > { %3922 = vmatpush1.bf16.msra.mxu0 %v5679_v30  ;;  %4332 = vmatpush1.bf16.msra.mxu1 %v5680_v31  ;;  %v5754_v30 = vld [vmem:[%s6889_s22 + $0x280] ss:$16 sps:$4 sm:$0xff]   ;;  %v5757_v31 = vld [vmem:[%s6889_s22 + $0x288] ss:$16 sps:$4 sm:$0xff]   ;;  %v5798_v58 = vld [vmem:[%s6889_s22 + $0x364] ss:$16 sps:$4 sm:$0xff]  }
  0x92   : > { %3923 = vmatprep.subr.bf16.mxu0 %v5681_v32  ;;  %4333 = vmatprep.subr.bf16.mxu1 %v5683_v33  ;;  %v5762_v32 = vld [vmem:[%s6889_s22 + $0x2a4] ss:$16 sps:$4 sm:$0xff]   ;;  %v5765_v33 = vld [vmem:[%s6889_s22 + $0x2ac] ss:$16 sps:$4 sm:$0xff]   ;;  %v5772_v43 = vld [vmem:[%s6889_s22 + $0x2e0] ss:$16 sps:$4 sm:$0xff]  }
  0x93   : > { %v5784_v52 = vld [vmem:[%s6889_s22 + $0x320] ss:$16 sps:$4 sm:$0xff]   ;;  %v5819_v7 = vld [vmem:[%s6889_s22 + $0x3cc] ss:$16 sps:$4 sm:$0xff]   ;;  %s5487_s10 = sshll.u32 %s6790_s24, 7  ;;  %s236_s20 = scalar_lea.vmem [#allocation8], %s4887_s4 }
  0x94   : > { %s4773_s23 = sshll.u32 %s236_s20, 4  ;;  %s7578_s5 = scalar_lea.hbm %s7624_s3, %s5487_s10  ;;  %s7580_s23 = int_to_ptr.vmem [resolvable:$true] %s4773_s23 }
  0x95   : > { %3924 = vmatpush1.bf16.msra.mxu0 %v5685_v34  ;;  %4334 = vmatpush1.bf16.msra.mxu1 %v5686_v35  ;;  %v5760_v34 = vld [vmem:[%s6889_s22 + $0x2a0] ss:$16 sps:$4 sm:$0xff]   ;;  %v5763_v35 = vld [vmem:[%s6889_s22 + $0x2a8] ss:$16 sps:$4 sm:$0xff]   ;;  %s4759_s6 = scalar_lea.sflag [#allocation4], %s6886_s18  ;;  %s6608_s24 = scalar_lea.vmem %s7580_s23, 128 }
  0x96   : > { %3925 = vmatprep.subr.bf16.mxu0 %v5687_v39  ;;  %4335 = vmatprep.subr.bf16.mxu1 %v5689_v40  ;;  %v5769_v39 = vld [vmem:[%s6889_s22 + $0x2c8] ss:$16 sps:$4 sm:$0xff]   ;;  %v5774_v40 = vld [vmem:[%s6889_s22 + $0x2e4] ss:$16 sps:$4 sm:$0xff]   ;;  %p6609_p11 = scmp.ne.s32.totalorder %s7580_s23, %s6608_s24  ;;  %p7645_p3 = scmp.ne.s32.totalorder %s7634_s26, 0 }
  0x97   : > { %s6688_s7 = smov [#allocation8]  }
  0x98   : > { %p6610_p0 = pnand %p6609_p11, %p7645_p3  ;;  %s6612_s9 = sshll.u32 %s6688_s7, 4  ;;  %s6613_s9 = int_to_ptr.vmem [resolvable:$false] %s6612_s9 }
  0x99   : > { %3926 = vmatpush1.bf16.msra.mxu0 %v5691_v41  ;;  %4336 = vmatpush1.bf16.msra.mxu1 %v5692_v44  ;;  %v5777_v41 = vld [vmem:[%s6889_s22 + $0x2ec] ss:$16 sps:$4 sm:$0xff]   ;;  %v5775_v44 = vld [vmem:[%s6889_s22 + $0x2e8] ss:$16 sps:$4 sm:$0xff]   ;;  %s6614_s8 = scalar_lea.vmem %s6613_s9, 256  ;;  %p6615_p12 = scmp.lt.s32.totalorder %s7580_s23, %s6613_s9 }
  0x9a   : > { %3927 = vmatprep.subr.bf16.mxu0 %v5693_v45  ;;  %4337 = vmatprep.subr.bf16.mxu1 %v5695_v46  ;;  %v5780_v45 = vld [vmem:[%s6889_s22 + $0x304] ss:$16 sps:$4 sm:$0xff]   ;;  %v5783_v46 = vld [vmem:[%s6889_s22 + $0x30c] ss:$16 sps:$4 sm:$0xff]   ;;  %p6611_p10 = pneg %p6610_p0  ;;  %p6616_p9 = scmp.lt.s32.totalorder %s6614_s8, %s6608_s24 }
  0x9c   : > { %p6617_p7 = por %p6616_p9, %p6615_p12 }
  0x9d   : > { %3928 = vmatpush1.bf16.msra.mxu0 %v5697_v47  ;;  %4338 = vmatpush1.bf16.msra.mxu1 %v5698_v48  ;;  %v5778_v47 = vld [vmem:[%s6889_s22 + $0x300] ss:$16 sps:$4 sm:$0xff]   ;;  %v5781_v48 = vld [vmem:[%s6889_s22 + $0x308] ss:$16 sps:$4 sm:$0xff]  }
  0x9e   : > { %3929 = vmatprep.subr.bf16.mxu0 %v5699_v50  ;;  %4339 = vmatprep.subr.bf16.mxu1 %v5701_v51  ;;  %v5786_v50 = vld [vmem:[%s6889_s22 + $0x324] ss:$16 sps:$4 sm:$0xff]   ;;  %v5789_v51 = vld [vmem:[%s6889_s22 + $0x32c] ss:$16 sps:$4 sm:$0xff]   ;;  %p6618_p1 = pnand %p6617_p7, %p6611_p10 }
  0xa1   : > { %3930 = vmatpush1.bf16.msra.mxu0 %v5703_v53  ;;  %4340 = vmatpush1.bf16.msra.mxu1 %v5704_v55  ;;  %v5787_v53 = vld [vmem:[%s6889_s22 + $0x328] ss:$16 sps:$4 sm:$0xff]   ;;  %v5795_v55 = vld [vmem:[%s6889_s22 + $0x34c] ss:$16 sps:$4 sm:$0xff]  }
  0xa2   : > { %3931 = vmatprep.subr.bf16.mxu0 %v5705_v56  ;;  %4341 = vmatprep.subr.bf16.mxu1 %v5707_v57  ;;  %v5790_v56 = vld [vmem:[%s6889_s22 + $0x340] ss:$16 sps:$4 sm:$0xff]   ;;  %v5793_v57 = vld [vmem:[%s6889_s22 + $0x348] ss:$16 sps:$4 sm:$0xff]  }
  0xa5   : > { %3932 = vmatpush1.bf16.msra.mxu0 %v5709_v59  ;;  %4342 = vmatpush1.bf16.msra.mxu1 %v5710_v60  ;;  %v5801_v59 = vld [vmem:[%s6889_s22 + $0x36c] ss:$16 sps:$4 sm:$0xff]   ;;  %v5796_v60 = vld [vmem:[%s6889_s22 + $0x360] ss:$16 sps:$4 sm:$0xff]  }
  0xa6   : > { %3933 = vmatprep.subr.bf16.mxu0 %v5711_v61  ;;  %4343 = vmatprep.subr.bf16.mxu1 %v5713_v62  ;;  %v5799_v61 = vld [vmem:[%s6889_s22 + $0x368] ss:$16 sps:$4 sm:$0xff]   ;;  %v5804_v62 = vld [vmem:[%s6889_s22 + $0x384] ss:$16 sps:$4 sm:$0xff]  }
  0xa9   : > { %3934 = vmatpush1.bf16.msra.mxu0 %v5715_v63  ;;  %4344 = vmatpush1.bf16.msra.mxu1 %v5716_v0  ;;  %v5807_v63 = vld [vmem:[%s6889_s22 + $0x38c] ss:$16 sps:$4 sm:$0xff]   ;;  %v5802_v0 = vld [vmem:[%s6889_s22 + $0x380] ss:$16 sps:$4 sm:$0xff]  }
  0xaa   : > { %3935 = vmatprep.subr.bf16.mxu0 %v5717_v1  ;;  %4345 = vmatprep.subr.bf16.mxu1 %v5719_v2  ;;  %v5805_v1 = vld [vmem:[%s6889_s22 + $0x388] ss:$16 sps:$4 sm:$0xff]   ;;  %v5810_v2 = vld [vmem:[%s6889_s22 + $0x3a4] ss:$16 sps:$4 sm:$0xff]  }
  0xad   : > { %3936 = vmatpush1.bf16.msra.mxu0 %v5721_v3  ;;  %4346 = vmatpush1.bf16.msra.mxu1 %v5722_v4  ;;  %v5813_v3 = vld [vmem:[%s6889_s22 + $0x3ac] ss:$16 sps:$4 sm:$0xff]   ;;  %v5808_v4 = vld [vmem:[%s6889_s22 + $0x3a0] ss:$16 sps:$4 sm:$0xff]  }
  0xae   : > { %3937 = vmatprep.subr.bf16.mxu0 %v5723_v5  ;;  %4347 = vmatprep.subr.bf16.mxu1 %v5725_v6  ;;  %v5811_v5 = vld [vmem:[%s6889_s22 + $0x3a8] ss:$16 sps:$4 sm:$0xff]   ;;  %v5816_v6 = vld [vmem:[%s6889_s22 + $0x3c4] ss:$16 sps:$4 sm:$0xff]  }
  0xb1   : > { %3938 = vmatpush1.bf16.msra.mxu0 %v5727_v8  ;;  %4348 = vmatpush1.bf16.msra.mxu1 %v5728_v9  ;;  %v5814_v8 = vld [vmem:[%s6889_s22 + $0x3c0] ss:$16 sps:$4 sm:$0xff]   ;;  %v5817_v9 = vld [vmem:[%s6889_s22 + $0x3c8] ss:$16 sps:$4 sm:$0xff]  }
  0xb2   : > { %3948 = vmatprep.subr.bf16.mxu0 %v5732_v10  ;;  %4358 = vmatprep.subr.bf16.mxu1 %v5735_v11  ;;  %v5822_v10 = vld [vmem:[%s6889_s22 + $0x3e4] ss:$16 sps:$4 sm:$0xff]   ;;  %v5825_v11 = vld [vmem:[%s6889_s22 + $0x3ec] ss:$16 sps:$4 sm:$0xff]  }
  0xb4   : > { %3940 = vmatmul.mubr.bf16.vlgmr.msra.gmra.mrb[0].mxu0 %v868_v54  ;;  %4350 = vmatmul.mubr.bf16.vlgmr.msra.gmra.mrb[0].mxu1 %v868_v54  ;;  %v5792_v54 = vld [vmem:[%s6889_s22 + $0x344] ss:$16 sps:$4 sm:$0xff]  }
  0xb5   : > { %3949 = vmatpush1.bf16.msra.mxu0 %v5730_v13  ;;  %4359 = vmatpush1.bf16.msra.mxu1 %v5733_v14  ;;  %v5820_v13 = vld [vmem:[%s6889_s22 + $0x3e0] ss:$16 sps:$4 sm:$0xff]   ;;  %v5823_v14 = vld [vmem:[%s6889_s22 + $0x3e8] ss:$16 sps:$4 sm:$0xff]  }
  0xb6   : > { %3950 = vmatprep.subr.bf16.mxu0 %v5738_v15  ;;  %4360 = vmatprep.subr.bf16.mxu1 %v5741_v16  ;;  %v5828_v15 = vld [vmem:[%s6889_s22 + $0x404] ss:$16 sps:$4 sm:$0xff]   ;;  %v5831_v16 = vld [vmem:[%s6889_s22 + $0x40c] ss:$16 sps:$4 sm:$0xff]  }
  0xb7   : > { %3980 = vmatprep.mubr.bf16.mxu0 %v877_v17  ;;  %4390 = vmatprep.mubr.bf16.mxu1 %v877_v17  ;;  %v5826_v17 = vld [vmem:[%s6889_s22 + $0x400] ss:$16 sps:$4 sm:$0xff]  }
  0xb9   : > { %3951 = vmatpush1.bf16.msra.mxu0 %v5736_v18  ;;  %4361 = vmatpush1.bf16.msra.mxu1 %v5739_v19  ;;  %v5829_v18 = vld [vmem:[%s6889_s22 + $0x408] ss:$16 sps:$4 sm:$0xff]  }
  0xba   : > { %3952 = vmatprep.subr.bf16.mxu0 %v5744_v20  ;;  %4362 = vmatprep.subr.bf16.mxu1 %v5747_v21  ;;  %v7038_v19 = vld [vmem:[#allocation2 + $0x8] sm:$0xff]  ;;  %v5837_v21 = vld [vmem:[%s6889_s22 + $0x42c] ss:$16 sps:$4 sm:$0xff]  }
  0xbb   : > { %v5834_v20 = vld [vmem:[%s6889_s22 + $0x424] ss:$16 sps:$4 sm:$0xff]  }
  0xbd   : > { %3953 = vmatpush1.bf16.msra.mxu0 %v5742_v22  ;;  %4363 = vmatpush1.bf16.msra.mxu1 %v5745_v23  ;;  %v7044_v22 = vrot.slane %v7038_v19, %v6942_v49 }
  0xbe   : > { %3954 = vmatprep.subr.bf16.mxu0 %v5750_v24  ;;  %4364 = vmatprep.subr.bf16.mxu1 %v5753_v25  ;;  %v5832_v24 = vld [vmem:[%s6889_s22 + $0x420] ss:$16 sps:$4 sm:$0xff]   ;;  %v5835_v25 = vld [vmem:[%s6889_s22 + $0x428] ss:$16 sps:$4 sm:$0xff]  }
  0xbf   : > { %v893_v23 = vcombine.high %v7044_v22, %v7044_v22 }
  0xc1   : > { %3955 = vmatpush1.bf16.msra.mxu0 %v5748_v26  ;;  %4365 = vmatpush1.bf16.msra.mxu1 %v5751_v27  ;;  %v5840_v26 = vld [vmem:[%s6889_s22 + $0x444] ss:$16 sps:$4 sm:$0xff]   ;;  %v5843_v27 = vld [vmem:[%s6889_s22 + $0x44c] ss:$16 sps:$4 sm:$0xff]  }
  0xc2   : > { %3956 = vmatprep.subr.bf16.mxu0 %v5756_v28  ;;  %4366 = vmatprep.subr.bf16.mxu1 %v5759_v29  ;;  %v5841_v28 = vld [vmem:[%s6889_s22 + $0x448] ss:$16 sps:$4 sm:$0xff]   ;;  %v5846_v29 = vld [vmem:[%s6889_s22 + $0x464] ss:$16 sps:$4 sm:$0xff]  }
  0xc5   : > { %3957 = vmatpush1.bf16.msra.mxu0 %v5754_v30  ;;  %4367 = vmatpush1.bf16.msra.mxu1 %v5757_v31  ;;  %v5849_v30 = vld [vmem:[%s6889_s22 + $0x46c] ss:$16 sps:$4 sm:$0xff]   ;;  %v5844_v31 = vld [vmem:[%s6889_s22 + $0x460] ss:$16 sps:$4 sm:$0xff]  }
  0xc6   : > { %3958 = vmatprep.subr.bf16.mxu0 %v5762_v32  ;;  %4368 = vmatprep.subr.bf16.mxu1 %v5765_v33  ;;  %v5847_v32 = vld [vmem:[%s6889_s22 + $0x468] ss:$16 sps:$4 sm:$0xff]   ;;  %v5852_v33 = vld [vmem:[%s6889_s22 + $0x484] ss:$16 sps:$4 sm:$0xff]  }
  0xc9   : > { %3959 = vmatpush1.bf16.msra.mxu0 %v5760_v34  ;;  %4369 = vmatpush1.bf16.msra.mxu1 %v5763_v35  ;;  %v5855_v34 = vld [vmem:[%s6889_s22 + $0x48c] ss:$16 sps:$4 sm:$0xff]   ;;  %v5850_v35 = vld [vmem:[%s6889_s22 + $0x480] ss:$16 sps:$4 sm:$0xff]  }
  0xca   : > { %3960 = vmatprep.subr.bf16.mxu0 %v5768_v36  ;;  %4370 = vmatprep.subr.bf16.mxu1 %v5771_v37  ;;  %v5853_v36 = vld [vmem:[%s6889_s22 + $0x488] ss:$16 sps:$4 sm:$0xff]   ;;  %v5858_v37 = vld [vmem:[%s6889_s22 + $0x4a4] ss:$16 sps:$4 sm:$0xff]  }
  0xcd   : > { %3961 = vmatpush1.bf16.msra.mxu0 %v5766_v38  ;;  %4371 = vmatpush1.bf16.msra.mxu1 %v5769_v39  ;;  %v5861_v38 = vld [vmem:[%s6889_s22 + $0x4ac] ss:$16 sps:$4 sm:$0xff]   ;;  %v5856_v39 = vld [vmem:[%s6889_s22 + $0x4a0] ss:$16 sps:$4 sm:$0xff]  }
  0xce   : > { %3962 = vmatprep.subr.bf16.mxu0 %v5774_v40  ;;  %4372 = vmatprep.subr.bf16.mxu1 %v5777_v41  ;;  %v5859_v40 = vld [vmem:[%s6889_s22 + $0x4a8] ss:$16 sps:$4 sm:$0xff]   ;;  %v5864_v41 = vld [vmem:[%s6889_s22 + $0x4c4] ss:$16 sps:$4 sm:$0xff]  }
  0xd1   : > { %3963 = vmatpush1.bf16.msra.mxu0 %v5772_v43  ;;  %4373 = vmatpush1.bf16.msra.mxu1 %v5775_v44  ;;  %v5867_v43 = vld [vmem:[%s6889_s22 + $0x4cc] ss:$16 sps:$4 sm:$0xff]   ;;  %v5862_v44 = vld [vmem:[%s6889_s22 + $0x4c0] ss:$16 sps:$4 sm:$0xff]  }
  0xd2   : > { %3964 = vmatprep.subr.bf16.mxu0 %v5780_v45  ;;  %4374 = vmatprep.subr.bf16.mxu1 %v5783_v46  ;;  %v5865_v45 = vld [vmem:[%s6889_s22 + $0x4c8] ss:$16 sps:$4 sm:$0xff]   ;;  %v5870_v46 = vld [vmem:[%s6889_s22 + $0x4e4] ss:$16 sps:$4 sm:$0xff]  }
  0xd5   : > { %3965 = vmatpush1.bf16.msra.mxu0 %v5778_v47  ;;  %4375 = vmatpush1.bf16.msra.mxu1 %v5781_v48  ;;  %v5873_v47 = vld [vmem:[%s6889_s22 + $0x4ec] ss:$16 sps:$4 sm:$0xff]   ;;  %v5868_v48 = vld [vmem:[%s6889_s22 + $0x4e0] ss:$16 sps:$4 sm:$0xff]  }
  0xd6   : > { %3966 = vmatprep.subr.bf16.mxu0 %v5786_v50  ;;  %4376 = vmatprep.subr.bf16.mxu1 %v5789_v51  ;;  %v5871_v50 = vld [vmem:[%s6889_s22 + $0x4e8] ss:$16 sps:$4 sm:$0xff]   ;;  %v5876_v51 = vld [vmem:[%s6889_s22 + $0x504] ss:$16 sps:$4 sm:$0xff]  }
  0xd9   : > { %3967 = vmatpush1.bf16.msra.mxu0 %v5784_v52  ;;  %4377 = vmatpush1.bf16.msra.mxu1 %v5787_v53  ;;  %v5879_v52 = vld [vmem:[%s6889_s22 + $0x50c] ss:$16 sps:$4 sm:$0xff]   ;;  %v5874_v53 = vld [vmem:[%s6889_s22 + $0x500] ss:$16 sps:$4 sm:$0xff]  }
  0xda   : > { %3968 = vmatprep.subr.bf16.mxu0 %v5792_v54  ;;  %4378 = vmatprep.subr.bf16.mxu1 %v5795_v55  ;;  %v5877_v54 = vld [vmem:[%s6889_s22 + $0x508] ss:$16 sps:$4 sm:$0xff]   ;;  %v5882_v55 = vld [vmem:[%s6889_s22 + $0x524] ss:$16 sps:$4 sm:$0xff]  }
  0xdd   : > { %3969 = vmatpush1.bf16.msra.mxu0 %v5790_v56  ;;  %4379 = vmatpush1.bf16.msra.mxu1 %v5793_v57  ;;  %v5885_v56 = vld [vmem:[%s6889_s22 + $0x52c] ss:$16 sps:$4 sm:$0xff]   ;;  %v5880_v57 = vld [vmem:[%s6889_s22 + $0x520] ss:$16 sps:$4 sm:$0xff]  }
  0xde   : > { %3970 = vmatprep.subr.bf16.mxu0 %v5798_v58  ;;  %4380 = vmatprep.subr.bf16.mxu1 %v5801_v59  ;;  %v5883_v58 = vld [vmem:[%s6889_s22 + $0x528] ss:$16 sps:$4 sm:$0xff]   ;;  %v5888_v59 = vld [vmem:[%s6889_s22 + $0x544] ss:$16 sps:$4 sm:$0xff]  }
  0xe1   : > { %3971 = vmatpush1.bf16.msra.mxu0 %v5796_v60  ;;  %4381 = vmatpush1.bf16.msra.mxu1 %v5799_v61  ;;  %v5891_v60 = vld [vmem:[%s6889_s22 + $0x54c] ss:$16 sps:$4 sm:$0xff]   ;;  %v5886_v61 = vld [vmem:[%s6889_s22 + $0x540] ss:$16 sps:$4 sm:$0xff]  }
  0xe2   : > { %3972 = vmatprep.subr.bf16.mxu0 %v5804_v62  ;;  %4382 = vmatprep.subr.bf16.mxu1 %v5807_v63  ;;  %v5889_v62 = vld [vmem:[%s6889_s22 + $0x548] ss:$16 sps:$4 sm:$0xff]   ;;  %v5894_v63 = vld [vmem:[%s6889_s22 + $0x564] ss:$16 sps:$4 sm:$0xff]  }
  0xe5   : > { %3973 = vmatpush1.bf16.msra.mxu0 %v5802_v0  ;;  %4383 = vmatpush1.bf16.msra.mxu1 %v5805_v1  ;;  %v5897_v0 = vld [vmem:[%s6889_s22 + $0x56c] ss:$16 sps:$4 sm:$0xff]   ;;  %v5892_v1 = vld [vmem:[%s6889_s22 + $0x560] ss:$16 sps:$4 sm:$0xff]  }
  0xe6   : > { %3974 = vmatprep.subr.bf16.mxu0 %v5810_v2  ;;  %4384 = vmatprep.subr.bf16.mxu1 %v5813_v3  ;;  %v5895_v2 = vld [vmem:[%s6889_s22 + $0x568] ss:$16 sps:$4 sm:$0xff]   ;;  %v5900_v3 = vld [vmem:[%s6889_s22 + $0x584] ss:$16 sps:$4 sm:$0xff]  }
  0xe9   : > { %3975 = vmatpush1.bf16.msra.mxu0 %v5808_v4  ;;  %4385 = vmatpush1.bf16.msra.mxu1 %v5811_v5  ;;  %v5903_v4 = vld [vmem:[%s6889_s22 + $0x58c] ss:$16 sps:$4 sm:$0xff]   ;;  %v5898_v5 = vld [vmem:[%s6889_s22 + $0x580] ss:$16 sps:$4 sm:$0xff]  }
  0xea   : > { %3976 = vmatprep.subr.bf16.mxu0 %v5816_v6  ;;  %4386 = vmatprep.subr.bf16.mxu1 %v5819_v7  ;;  %v5901_v6 = vld [vmem:[%s6889_s22 + $0x588] ss:$16 sps:$4 sm:$0xff]   ;;  %v5906_v7 = vld [vmem:[%s6889_s22 + $0x5a4] ss:$16 sps:$4 sm:$0xff]  }
  0xed   : > { %3977 = vmatpush1.bf16.msra.mxu0 %v5814_v8  ;;  %4387 = vmatpush1.bf16.msra.mxu1 %v5817_v9  ;;  %v5909_v8 = vld [vmem:[%s6889_s22 + $0x5ac] ss:$16 sps:$4 sm:$0xff]   ;;  %v5904_v9 = vld [vmem:[%s6889_s22 + $0x5a0] ss:$16 sps:$4 sm:$0xff]  }
  0xee   : > { %3978 = vmatprep.subr.bf16.mxu0 %v5822_v10  ;;  %4388 = vmatprep.subr.bf16.mxu1 %v5825_v11  ;;  %v5907_v10 = vld [vmem:[%s6889_s22 + $0x5a8] ss:$16 sps:$4 sm:$0xff]   ;;  %v5912_v11 = vld [vmem:[%s6889_s22 + $0x5c4] ss:$16 sps:$4 sm:$0xff]  }
  0xf1   : > { %3979 = vmatpush1.bf16.msra.mxu0 %v5820_v13  ;;  %4389 = vmatpush1.bf16.msra.mxu1 %v5823_v14  ;;  %v5915_v13 = vld [vmem:[%s6889_s22 + $0x5cc] ss:$16 sps:$4 sm:$0xff]   ;;  %v5910_v14 = vld [vmem:[%s6889_s22 + $0x5c0] ss:$16 sps:$4 sm:$0xff]  }
  0xf2   : > { %3989 = vmatprep.subr.bf16.mxu0 %v5828_v15  ;;  %4399 = vmatprep.subr.bf16.mxu1 %v5831_v16  ;;  %v5913_v15 = vld [vmem:[%s6889_s22 + $0x5c8] ss:$16 sps:$4 sm:$0xff]   ;;  %v5918_v16 = vld [vmem:[%s6889_s22 + $0x5e4] ss:$16 sps:$4 sm:$0xff]  }
  0xf4   : > { %3981 = vmatmul.mubr.bf16.vlgmr.msra.gmra.mrb[0].mxu0 %v6968_v12  ;;  %4391 = vmatmul.mubr.bf16.vlgmr.msra.gmra.mrb[0].mxu1 %v6968_v12  ;;  %v5838_v12 = vld [vmem:[%s6889_s22 + $0x440] ss:$16 sps:$4 sm:$0xff]  }
  0xf5   : > { %3990 = vmatpush1.bf16.msra.mxu0 %v5826_v17  ;;  %4400 = vmatpush1.bf16.msra.mxu1 %v5829_v18  ;;  %v5921_v17 = vld [vmem:[%s6889_s22 + $0x5ec] ss:$16 sps:$4 sm:$0xff]   ;;  %v878_v18 = vcombine.high %v7038_v19, %v7038_v19  ;;  %v5925_v19 = vld [vmem:[%s6889_s22 + $0x608] ss:$16 sps:$4 sm:$0xff]  }
  0xf6   : > { %3991 = vmatprep.subr.bf16.mxu0 %v5834_v20  ;;  %4401 = vmatprep.subr.bf16.mxu1 %v5837_v21  ;;  %v5916_v20 = vld [vmem:[%s6889_s22 + $0x5e0] ss:$16 sps:$4 sm:$0xff]   ;;  %v5919_v21 = vld [vmem:[%s6889_s22 + $0x5e8] ss:$16 sps:$4 sm:$0xff]  }
  0xf7   : > { %4021 = vmatprep.mubr.bf16.mxu0 %v893_v23  ;;  %4431 = vmatprep.mubr.bf16.mxu1 %v893_v23  ;;  %v5924_v23 = vld [vmem:[%s6889_s22 + $0x604] ss:$16 sps:$4 sm:$0xff]  }
  0xf9   : > { %3992 = vmatpush1.bf16.msra.mxu0 %v5832_v24  ;;  %4402 = vmatpush1.bf16.msra.mxu1 %v5835_v25  ;;  %v5927_v24 = vld [vmem:[%s6889_s22 + $0x60c] ss:$16 sps:$4 sm:$0xff]   ;;  %v7113_v25 = vrot.slane %v878_v18, %v6942_v49 }
  0xfa   : > { %3993 = vmatprep.subr.bf16.mxu0 %v5840_v26  ;;  %4403 = vmatprep.subr.bf16.mxu1 %v5843_v27  ;;  %v5922_v26 = vld [vmem:[%s6889_s22 + $0x600] ss:$16 sps:$4 sm:$0xff]   ;;  %v5930_v27 = vld [vmem:[%s6889_s22 + $0x624] ss:$16 sps:$4 sm:$0xff]   ;;  %v6011_v18 = vld [vmem:[%s6889_s22 + $0x7cc] ss:$16 sps:$4 sm:$0xff]  }
  0xfd   : > { %3994 = vmatpush1.bf16.msra.mxu0 %v5838_v12  ;;  %4404 = vmatpush1.bf16.msra.mxu1 %v5841_v28  ;;  %v5933_v12 = vld [vmem:[%s6889_s22 + $0x62c] ss:$16 sps:$4 sm:$0xff]   ;;  %v894_v28 = vcombine.high %v7113_v25, %v7113_v25 }
  0xfe   : > { %3995 = vmatprep.subr.bf16.mxu0 %v5846_v29  ;;  %4405 = vmatprep.subr.bf16.mxu1 %v5849_v30  ;;  %v5928_v29 = vld [vmem:[%s6889_s22 + $0x620] ss:$16 sps:$4 sm:$0xff]   ;;  %v5931_v30 = vld [vmem:[%s6889_s22 + $0x628] ss:$16 sps:$4 sm:$0xff]  }
 0x101   : > { %3996 = vmatpush1.bf16.msra.mxu0 %v5844_v31  ;;  %4406 = vmatpush1.bf16.msra.mxu1 %v5847_v32  ;;  %v5936_v31 = vld [vmem:[%s6889_s22 + $0x644] ss:$16 sps:$4 sm:$0xff]   ;;  %v5939_v32 = vld [vmem:[%s6889_s22 + $0x64c] ss:$16 sps:$4 sm:$0xff]  }
 0x102   : > { %3997 = vmatprep.subr.bf16.mxu0 %v5852_v33  ;;  %4407 = vmatprep.subr.bf16.mxu1 %v5855_v34  ;;  %v5934_v33 = vld [vmem:[%s6889_s22 + $0x640] ss:$16 sps:$4 sm:$0xff]   ;;  %v5942_v34 = vld [vmem:[%s6889_s22 + $0x664] ss:$16 sps:$4 sm:$0xff]  }
 0x105   : > { %3998 = vmatpush1.bf16.msra.mxu0 %v5850_v35  ;;  %4408 = vmatpush1.bf16.msra.mxu1 %v5853_v36  ;;  %v5945_v35 = vld [vmem:[%s6889_s22 + $0x66c] ss:$16 sps:$4 sm:$0xff]   ;;  %v5940_v36 = vld [vmem:[%s6889_s22 + $0x660] ss:$16 sps:$4 sm:$0xff]  }
 0x106   : > { %3999 = vmatprep.subr.bf16.mxu0 %v5858_v37  ;;  %4409 = vmatprep.subr.bf16.mxu1 %v5861_v38  ;;  %v5943_v37 = vld [vmem:[%s6889_s22 + $0x668] ss:$16 sps:$4 sm:$0xff]   ;;  %v5948_v38 = vld [vmem:[%s6889_s22 + $0x684] ss:$16 sps:$4 sm:$0xff]  }
 0x109   : > { %4000 = vmatpush1.bf16.msra.mxu0 %v5856_v39  ;;  %4410 = vmatpush1.bf16.msra.mxu1 %v5859_v40  ;;  %v5951_v39 = vld [vmem:[%s6889_s22 + $0x68c] ss:$16 sps:$4 sm:$0xff]   ;;  %v5946_v40 = vld [vmem:[%s6889_s22 + $0x680] ss:$16 sps:$4 sm:$0xff]  }
 0x10a   : > { %4001 = vmatprep.subr.bf16.mxu0 %v5864_v41  ;;  %4411 = vmatprep.subr.bf16.mxu1 %v5867_v43  ;;  %v5949_v41 = vld [vmem:[%s6889_s22 + $0x688] ss:$16 sps:$4 sm:$0xff]   ;;  %v5954_v43 = vld [vmem:[%s6889_s22 + $0x6a4] ss:$16 sps:$4 sm:$0xff]  }
 0x10d   : > { %4002 = vmatpush1.bf16.msra.mxu0 %v5862_v44  ;;  %4412 = vmatpush1.bf16.msra.mxu1 %v5865_v45  ;;  %v5957_v44 = vld [vmem:[%s6889_s22 + $0x6ac] ss:$16 sps:$4 sm:$0xff]   ;;  %v5952_v45 = vld [vmem:[%s6889_s22 + $0x6a0] ss:$16 sps:$4 sm:$0xff]  }
 0x10e   : > { %4003 = vmatprep.subr.bf16.mxu0 %v5870_v46  ;;  %4413 = vmatprep.subr.bf16.mxu1 %v5873_v47  ;;  %v5955_v46 = vld [vmem:[%s6889_s22 + $0x6a8] ss:$16 sps:$4 sm:$0xff]   ;;  %v5960_v47 = vld [vmem:[%s6889_s22 + $0x6c4] ss:$16 sps:$4 sm:$0xff]  }
 0x111   : > { %4004 = vmatpush1.bf16.msra.mxu0 %v5868_v48  ;;  %4414 = vmatpush1.bf16.msra.mxu1 %v5871_v50  ;;  %v5963_v48 = vld [vmem:[%s6889_s22 + $0x6cc] ss:$16 sps:$4 sm:$0xff]   ;;  %v5958_v50 = vld [vmem:[%s6889_s22 + $0x6c0] ss:$16 sps:$4 sm:$0xff]  }
 0x112   : > { %4005 = vmatprep.subr.bf16.mxu0 %v5876_v51  ;;  %4415 = vmatprep.subr.bf16.mxu1 %v5879_v52  ;;  %v5961_v51 = vld [vmem:[%s6889_s22 + $0x6c8] ss:$16 sps:$4 sm:$0xff]   ;;  %v5966_v52 = vld [vmem:[%s6889_s22 + $0x6e4] ss:$16 sps:$4 sm:$0xff]  }
 0x115   : > { %4006 = vmatpush1.bf16.msra.mxu0 %v5874_v53  ;;  %4416 = vmatpush1.bf16.msra.mxu1 %v5877_v54  ;;  %v5969_v53 = vld [vmem:[%s6889_s22 + $0x6ec] ss:$16 sps:$4 sm:$0xff]   ;;  %v5964_v54 = vld [vmem:[%s6889_s22 + $0x6e0] ss:$16 sps:$4 sm:$0xff]  }
 0x116   : > { %4007 = vmatprep.subr.bf16.mxu0 %v5882_v55  ;;  %4417 = vmatprep.subr.bf16.mxu1 %v5885_v56  ;;  %v5967_v55 = vld [vmem:[%s6889_s22 + $0x6e8] ss:$16 sps:$4 sm:$0xff]   ;;  %v5972_v56 = vld [vmem:[%s6889_s22 + $0x704] ss:$16 sps:$4 sm:$0xff]  }
 0x119   : > { %4008 = vmatpush1.bf16.msra.mxu0 %v5880_v57  ;;  %4418 = vmatpush1.bf16.msra.mxu1 %v5883_v58  ;;  %v5975_v57 = vld [vmem:[%s6889_s22 + $0x70c] ss:$16 sps:$4 sm:$0xff]   ;;  %v5970_v58 = vld [vmem:[%s6889_s22 + $0x700] ss:$16 sps:$4 sm:$0xff]  }
 0x11a   : > { %4009 = vmatprep.subr.bf16.mxu0 %v5888_v59  ;;  %4419 = vmatprep.subr.bf16.mxu1 %v5891_v60  ;;  %v5973_v59 = vld [vmem:[%s6889_s22 + $0x708] ss:$16 sps:$4 sm:$0xff]   ;;  %v5978_v60 = vld [vmem:[%s6889_s22 + $0x724] ss:$16 sps:$4 sm:$0xff]  }
 0x11d   : > { %4010 = vmatpush1.bf16.msra.mxu0 %v5886_v61  ;;  %4420 = vmatpush1.bf16.msra.mxu1 %v5889_v62  ;;  %v5981_v61 = vld [vmem:[%s6889_s22 + $0x72c] ss:$16 sps:$4 sm:$0xff]   ;;  %v5976_v62 = vld [vmem:[%s6889_s22 + $0x720] ss:$16 sps:$4 sm:$0xff]  }
 0x11e   : > { %4011 = vmatprep.subr.bf16.mxu0 %v5894_v63  ;;  %4421 = vmatprep.subr.bf16.mxu1 %v5897_v0  ;;  %v5979_v63 = vld [vmem:[%s6889_s22 + $0x728] ss:$16 sps:$4 sm:$0xff]   ;;  %v5984_v0 = vld [vmem:[%s6889_s22 + $0x744] ss:$16 sps:$4 sm:$0xff]  }
 0x121   : > { %4012 = vmatpush1.bf16.msra.mxu0 %v5892_v1  ;;  %4422 = vmatpush1.bf16.msra.mxu1 %v5895_v2  ;;  %v5987_v1 = vld [vmem:[%s6889_s22 + $0x74c] ss:$16 sps:$4 sm:$0xff]   ;;  %v5982_v2 = vld [vmem:[%s6889_s22 + $0x740] ss:$16 sps:$4 sm:$0xff]  }
 0x122   : > { %4013 = vmatprep.subr.bf16.mxu0 %v5900_v3  ;;  %4423 = vmatprep.subr.bf16.mxu1 %v5903_v4  ;;  %v5985_v3 = vld [vmem:[%s6889_s22 + $0x748] ss:$16 sps:$4 sm:$0xff]   ;;  %v5990_v4 = vld [vmem:[%s6889_s22 + $0x764] ss:$16 sps:$4 sm:$0xff]  }
 0x125   : > { %4014 = vmatpush1.bf16.msra.mxu0 %v5898_v5  ;;  %4424 = vmatpush1.bf16.msra.mxu1 %v5901_v6  ;;  %v5993_v5 = vld [vmem:[%s6889_s22 + $0x76c] ss:$16 sps:$4 sm:$0xff]   ;;  %v5988_v6 = vld [vmem:[%s6889_s22 + $0x760] ss:$16 sps:$4 sm:$0xff]  }
 0x126   : > { %4015 = vmatprep.subr.bf16.mxu0 %v5906_v7  ;;  %4425 = vmatprep.subr.bf16.mxu1 %v5909_v8  ;;  %v5991_v7 = vld [vmem:[%s6889_s22 + $0x768] ss:$16 sps:$4 sm:$0xff]   ;;  %v5996_v8 = vld [vmem:[%s6889_s22 + $0x784] ss:$16 sps:$4 sm:$0xff]  }
 0x129   : > { %4016 = vmatpush1.bf16.msra.mxu0 %v5904_v9  ;;  %4426 = vmatpush1.bf16.msra.mxu1 %v5907_v10  ;;  %v5999_v9 = vld [vmem:[%s6889_s22 + $0x78c] ss:$16 sps:$4 sm:$0xff]   ;;  %v5994_v10 = vld [vmem:[%s6889_s22 + $0x780] ss:$16 sps:$4 sm:$0xff]  }
 0x12a   : > { %4017 = vmatprep.subr.bf16.mxu0 %v5912_v11  ;;  %4427 = vmatprep.subr.bf16.mxu1 %v5915_v13  ;;  %v5997_v11 = vld [vmem:[%s6889_s22 + $0x788] ss:$16 sps:$4 sm:$0xff]   ;;  %v6002_v13 = vld [vmem:[%s6889_s22 + $0x7a4] ss:$16 sps:$4 sm:$0xff]  }
 0x12d   : > { %4018 = vmatpush1.bf16.msra.mxu0 %v5910_v14  ;;  %4428 = vmatpush1.bf16.msra.mxu1 %v5913_v15  ;;  %v6005_v14 = vld [vmem:[%s6889_s22 + $0x7ac] ss:$16 sps:$4 sm:$0xff]   ;;  %v6000_v15 = vld [vmem:[%s6889_s22 + $0x7a0] ss:$16 sps:$4 sm:$0xff]  }
 0x12e   : > { %4019 = vmatprep.subr.bf16.mxu0 %v5918_v16  ;;  %4429 = vmatprep.subr.bf16.mxu1 %v5921_v17  ;;  %v6003_v16 = vld [vmem:[%s6889_s22 + $0x7a8] ss:$16 sps:$4 sm:$0xff]   ;;  %v6008_v17 = vld [vmem:[%s6889_s22 + $0x7c4] ss:$16 sps:$4 sm:$0xff]  }
 0x131   : > { %4020 = vmatpush1.bf16.msra.mxu0 %v5916_v20  ;;  %4430 = vmatpush1.bf16.msra.mxu1 %v5919_v21  ;;  %v6006_v20 = vld [vmem:[%s6889_s22 + $0x7c0] ss:$16 sps:$4 sm:$0xff]   ;;  %v6009_v21 = vld [vmem:[%s6889_s22 + $0x7c8] ss:$16 sps:$4 sm:$0xff]  }
 0x132   : > { %4030 = vmatprep.subr.bf16.mxu0 %v5924_v23  ;;  %4440 = vmatprep.subr.bf16.mxu1 %v5927_v24  ;;  %v6014_v23 = vld [vmem:[%s6889_s22 + $0x7e4] ss:$16 sps:$4 sm:$0xff]   ;;  %v6017_v24 = vld [vmem:[%s6889_s22 + $0x7ec] ss:$16 sps:$4 sm:$0xff]  }
 0x134   : > { %4022 = vmatmul.mubr.bf16.vlgmr.msra.gmra.mrb[0].mxu0 %v7044_v22  ;;  %4432 = vmatmul.mubr.bf16.vlgmr.msra.gmra.mrb[0].mxu1 %v7044_v22  ;;  %v5937_v22 = vld [vmem:[%s6889_s22 + $0x648] ss:$16 sps:$4 sm:$0xff]  }
 0x135   : > { %4031 = vmatpush1.bf16.msra.mxu0 %v5922_v26  ;;  %4441 = vmatpush1.bf16.msra.mxu1 %v5925_v19  ;;  %v6012_v26 = vld [vmem:[%s6889_s22 + $0x7e0] ss:$16 sps:$4 sm:$0xff]  }
 0x136   : > { %4032 = vmatprep.subr.bf16.mxu0 %v5930_v27  ;;  %4442 = vmatprep.subr.bf16.mxu1 %v5933_v12  ;;  %v7180_v19 = vld [vmem:[#allocation2 + $0x10] sm:$0xff]  ;;  %v6021_v12 = vld [vmem:[%s6889_s22 + $0x804] ss:$16 sps:$4 sm:$0xff]  }
 0x137   : > { %4062 = vmatprep.mubr.bf16.mxu0 %v894_v28  ;;  %4472 = vmatprep.mubr.bf16.mxu1 %v894_v28  ;;  %v6015_v27 = vld [vmem:[%s6889_s22 + $0x7e8] ss:$16 sps:$4 sm:$0xff]   ;;  %v6024_v28 = vld [vmem:[%s6889_s22 + $0x80c] ss:$16 sps:$4 sm:$0xff]  }
 0x139   : > { %4033 = vmatpush1.bf16.msra.mxu0 %v5928_v29  ;;  %4443 = vmatpush1.bf16.msra.mxu1 %v5931_v30  ;;  %v7187_v29 = vrot.slane %v7180_v19, %v6942_v49  ;;  %v6019_v30 = vld [vmem:[%s6889_s22 + $0x800] ss:$16 sps:$4 sm:$0xff]  }
 0x13a   : > { %4034 = vmatprep.subr.bf16.mxu0 %v5936_v31  ;;  %4444 = vmatprep.subr.bf16.mxu1 %v5939_v32  ;;  %v6022_v31 = vld [vmem:[%s6889_s22 + $0x808] ss:$16 sps:$4 sm:$0xff]   ;;  %v6027_v32 = vld [vmem:[%s6889_s22 + $0x824] ss:$16 sps:$4 sm:$0xff]  }
 0x13d   : > { %4035 = vmatpush1.bf16.msra.mxu0 %v5934_v33  ;;  %4445 = vmatpush1.bf16.msra.mxu1 %v5937_v22  ;;  %v6030_v33 = vld [vmem:[%s6889_s22 + $0x82c] ss:$16 sps:$4 sm:$0xff]   ;;  %v910_v22 = vcombine.high %v7187_v29, %v7187_v29 }
 0x13e   : > { %4036 = vmatprep.subr.bf16.mxu0 %v5942_v34  ;;  %4446 = vmatprep.subr.bf16.mxu1 %v5945_v35  ;;  %v6025_v34 = vld [vmem:[%s6889_s22 + $0x820] ss:$16 sps:$4 sm:$0xff]   ;;  %v6028_v35 = vld [vmem:[%s6889_s22 + $0x828] ss:$16 sps:$4 sm:$0xff]  }
 0x141   : > { %4037 = vmatpush1.bf16.msra.mxu0 %v5940_v36  ;;  %4447 = vmatpush1.bf16.msra.mxu1 %v5943_v37  ;;  %v6033_v36 = vld [vmem:[%s6889_s22 + $0x844] ss:$16 sps:$4 sm:$0xff]   ;;  %v6036_v37 = vld [vmem:[%s6889_s22 + $0x84c] ss:$16 sps:$4 sm:$0xff]  }
 0x142   : > { %4038 = vmatprep.subr.bf16.mxu0 %v5948_v38  ;;  %4448 = vmatprep.subr.bf16.mxu1 %v5951_v39  ;;  %v6031_v38 = vld [vmem:[%s6889_s22 + $0x840] ss:$16 sps:$4 sm:$0xff]   ;;  %v6039_v39 = vld [vmem:[%s6889_s22 + $0x864] ss:$16 sps:$4 sm:$0xff]  }
 0x145   : > { %4039 = vmatpush1.bf16.msra.mxu0 %v5946_v40  ;;  %4449 = vmatpush1.bf16.msra.mxu1 %v5949_v41  ;;  %v6042_v40 = vld [vmem:[%s6889_s22 + $0x86c] ss:$16 sps:$4 sm:$0xff]   ;;  %v6037_v41 = vld [vmem:[%s6889_s22 + $0x860] ss:$16 sps:$4 sm:$0xff]  }
 0x146   : > { %4040 = vmatprep.subr.bf16.mxu0 %v5954_v43  ;;  %4450 = vmatprep.subr.bf16.mxu1 %v5957_v44  ;;  %v6040_v43 = vld [vmem:[%s6889_s22 + $0x868] ss:$16 sps:$4 sm:$0xff]   ;;  %v6045_v44 = vld [vmem:[%s6889_s22 + $0x884] ss:$16 sps:$4 sm:$0xff]  }
 0x149   : > { %4041 = vmatpush1.bf16.msra.mxu0 %v5952_v45  ;;  %4451 = vmatpush1.bf16.msra.mxu1 %v5955_v46  ;;  %v6048_v45 = vld [vmem:[%s6889_s22 + $0x88c] ss:$16 sps:$4 sm:$0xff]   ;;  %v6043_v46 = vld [vmem:[%s6889_s22 + $0x880] ss:$16 sps:$4 sm:$0xff]  }
 0x14a   : > { %4042 = vmatprep.subr.bf16.mxu0 %v5960_v47  ;;  %4452 = vmatprep.subr.bf16.mxu1 %v5963_v48  ;;  %v6046_v47 = vld [vmem:[%s6889_s22 + $0x888] ss:$16 sps:$4 sm:$0xff]   ;;  %v6051_v48 = vld [vmem:[%s6889_s22 + $0x8a4] ss:$16 sps:$4 sm:$0xff]  }
 0x14d   : > { %4043 = vmatpush1.bf16.msra.mxu0 %v5958_v50  ;;  %4453 = vmatpush1.bf16.msra.mxu1 %v5961_v51  ;;  %v6054_v50 = vld [vmem:[%s6889_s22 + $0x8ac] ss:$16 sps:$4 sm:$0xff]   ;;  %v6049_v51 = vld [vmem:[%s6889_s22 + $0x8a0] ss:$16 sps:$4 sm:$0xff]  }
 0x14e   : > { %4044 = vmatprep.subr.bf16.mxu0 %v5966_v52  ;;  %4454 = vmatprep.subr.bf16.mxu1 %v5969_v53  ;;  %v6052_v52 = vld [vmem:[%s6889_s22 + $0x8a8] ss:$16 sps:$4 sm:$0xff]   ;;  %v6057_v53 = vld [vmem:[%s6889_s22 + $0x8c4] ss:$16 sps:$4 sm:$0xff]  }
 0x151   : > { %4045 = vmatpush1.bf16.msra.mxu0 %v5964_v54  ;;  %4455 = vmatpush1.bf16.msra.mxu1 %v5967_v55  ;;  %v6060_v54 = vld [vmem:[%s6889_s22 + $0x8cc] ss:$16 sps:$4 sm:$0xff]   ;;  %v6055_v55 = vld [vmem:[%s6889_s22 + $0x8c0] ss:$16 sps:$4 sm:$0xff]  }
 0x152   : > { %4046 = vmatprep.subr.bf16.mxu0 %v5972_v56  ;;  %4456 = vmatprep.subr.bf16.mxu1 %v5975_v57  ;;  %v6058_v56 = vld [vmem:[%s6889_s22 + $0x8c8] ss:$16 sps:$4 sm:$0xff]   ;;  %v6063_v57 = vld [vmem:[%s6889_s22 + $0x8e4] ss:$16 sps:$4 sm:$0xff]  }
 0x155   : > { %4047 = vmatpush1.bf16.msra.mxu0 %v5970_v58  ;;  %4457 = vmatpush1.bf16.msra.mxu1 %v5973_v59  ;;  %v6066_v58 = vld [vmem:[%s6889_s22 + $0x8ec] ss:$16 sps:$4 sm:$0xff]   ;;  %v6061_v59 = vld [vmem:[%s6889_s22 + $0x8e0] ss:$16 sps:$4 sm:$0xff]  }
 0x156   : > { %4048 = vmatprep.subr.bf16.mxu0 %v5978_v60  ;;  %4458 = vmatprep.subr.bf16.mxu1 %v5981_v61  ;;  %v6064_v60 = vld [vmem:[%s6889_s22 + $0x8e8] ss:$16 sps:$4 sm:$0xff]   ;;  %v6069_v61 = vld [vmem:[%s6889_s22 + $0x904] ss:$16 sps:$4 sm:$0xff]  }
 0x159   : > { %4049 = vmatpush1.bf16.msra.mxu0 %v5976_v62  ;;  %4459 = vmatpush1.bf16.msra.mxu1 %v5979_v63  ;;  %v6072_v62 = vld [vmem:[%s6889_s22 + $0x90c] ss:$16 sps:$4 sm:$0xff]   ;;  %v6067_v63 = vld [vmem:[%s6889_s22 + $0x900] ss:$16 sps:$4 sm:$0xff]  }
 0x15a   : > { %4050 = vmatprep.subr.bf16.mxu0 %v5984_v0  ;;  %4460 = vmatprep.subr.bf16.mxu1 %v5987_v1  ;;  %v6070_v0 = vld [vmem:[%s6889_s22 + $0x908] ss:$16 sps:$4 sm:$0xff]   ;;  %v6075_v1 = vld [vmem:[%s6889_s22 + $0x924] ss:$16 sps:$4 sm:$0xff]  }
 0x15d   : > { %4051 = vmatpush1.bf16.msra.mxu0 %v5982_v2  ;;  %4461 = vmatpush1.bf16.msra.mxu1 %v5985_v3  ;;  %v6078_v2 = vld [vmem:[%s6889_s22 + $0x92c] ss:$16 sps:$4 sm:$0xff]   ;;  %v6073_v3 = vld [vmem:[%s6889_s22 + $0x920] ss:$16 sps:$4 sm:$0xff]  }
 0x15e   : > { %4052 = vmatprep.subr.bf16.mxu0 %v5990_v4  ;;  %4462 = vmatprep.subr.bf16.mxu1 %v5993_v5  ;;  %v6076_v4 = vld [vmem:[%s6889_s22 + $0x928] ss:$16 sps:$4 sm:$0xff]   ;;  %v6081_v5 = vld [vmem:[%s6889_s22 + $0x944] ss:$16 sps:$4 sm:$0xff]  }
 0x161   : > { %4053 = vmatpush1.bf16.msra.mxu0 %v5988_v6  ;;  %4463 = vmatpush1.bf16.msra.mxu1 %v5991_v7  ;;  %v6084_v6 = vld [vmem:[%s6889_s22 + $0x94c] ss:$16 sps:$4 sm:$0xff]   ;;  %v6079_v7 = vld [vmem:[%s6889_s22 + $0x940] ss:$16 sps:$4 sm:$0xff]  }
 0x162   : > { %4054 = vmatprep.subr.bf16.mxu0 %v5996_v8  ;;  %4464 = vmatprep.subr.bf16.mxu1 %v5999_v9  ;;  %v6082_v8 = vld [vmem:[%s6889_s22 + $0x948] ss:$16 sps:$4 sm:$0xff]   ;;  %v6087_v9 = vld [vmem:[%s6889_s22 + $0x964] ss:$16 sps:$4 sm:$0xff]  }
 0x165   : > { %4055 = vmatpush1.bf16.msra.mxu0 %v5994_v10  ;;  %4465 = vmatpush1.bf16.msra.mxu1 %v5997_v11  ;;  %v6090_v10 = vld [vmem:[%s6889_s22 + $0x96c] ss:$16 sps:$4 sm:$0xff]   ;;  %v6085_v11 = vld [vmem:[%s6889_s22 + $0x960] ss:$16 sps:$4 sm:$0xff]  }
 0x166   : > { %4056 = vmatprep.subr.bf16.mxu0 %v6002_v13  ;;  %4466 = vmatprep.subr.bf16.mxu1 %v6005_v14  ;;  %v6088_v13 = vld [vmem:[%s6889_s22 + $0x968] ss:$16 sps:$4 sm:$0xff]   ;;  %v6093_v14 = vld [vmem:[%s6889_s22 + $0x984] ss:$16 sps:$4 sm:$0xff]  }
 0x169   : > { %4057 = vmatpush1.bf16.msra.mxu0 %v6000_v15  ;;  %4467 = vmatpush1.bf16.msra.mxu1 %v6003_v16  ;;  %v6096_v15 = vld [vmem:[%s6889_s22 + $0x98c] ss:$16 sps:$4 sm:$0xff]   ;;  %v6091_v16 = vld [vmem:[%s6889_s22 + $0x980] ss:$16 sps:$4 sm:$0xff]  }
 0x16a   : > { %4058 = vmatprep.subr.bf16.mxu0 %v6008_v17  ;;  %4468 = vmatprep.subr.bf16.mxu1 %v6011_v18  ;;  %v6094_v17 = vld [vmem:[%s6889_s22 + $0x988] ss:$16 sps:$4 sm:$0xff]   ;;  %v6099_v18 = vld [vmem:[%s6889_s22 + $0x9a4] ss:$16 sps:$4 sm:$0xff]  }
 0x16d   : > { %4059 = vmatpush1.bf16.msra.mxu0 %v6006_v20  ;;  %4469 = vmatpush1.bf16.msra.mxu1 %v6009_v21  ;;  %v6102_v20 = vld [vmem:[%s6889_s22 + $0x9ac] ss:$16 sps:$4 sm:$0xff]   ;;  %v6097_v21 = vld [vmem:[%s6889_s22 + $0x9a0] ss:$16 sps:$4 sm:$0xff]  }
 0x16e   : > { %4060 = vmatprep.subr.bf16.mxu0 %v6014_v23  ;;  %4470 = vmatprep.subr.bf16.mxu1 %v6017_v24  ;;  %v6100_v23 = vld [vmem:[%s6889_s22 + $0x9a8] ss:$16 sps:$4 sm:$0xff]   ;;  %v6105_v24 = vld [vmem:[%s6889_s22 + $0x9c4] ss:$16 sps:$4 sm:$0xff]  }
 0x171   : > { %4061 = vmatpush1.bf16.msra.mxu0 %v6012_v26  ;;  %4471 = vmatpush1.bf16.msra.mxu1 %v6015_v27  ;;  %v6108_v26 = vld [vmem:[%s6889_s22 + $0x9cc] ss:$16 sps:$4 sm:$0xff]   ;;  %v6103_v27 = vld [vmem:[%s6889_s22 + $0x9c0] ss:$16 sps:$4 sm:$0xff]  }
 0x172   : > { %4071 = vmatprep.subr.bf16.mxu0 %v6021_v12  ;;  %4481 = vmatprep.subr.bf16.mxu1 %v6024_v28  ;;  %v6106_v12 = vld [vmem:[%s6889_s22 + $0x9c8] ss:$16 sps:$4 sm:$0xff]   ;;  %v6111_v28 = vld [vmem:[%s6889_s22 + $0x9e4] ss:$16 sps:$4 sm:$0xff]  }
 0x174   : > { %4063 = vmatmul.mubr.bf16.vlgmr.msra.gmra.mrb[0].mxu0 %v7113_v25  ;;  %4473 = vmatmul.mubr.bf16.vlgmr.msra.gmra.mrb[0].mxu1 %v7113_v25  ;;  %v6034_v25 = vld [vmem:[%s6889_s22 + $0x848] ss:$16 sps:$4 sm:$0xff]  }
 0x175   : > { %4072 = vmatpush1.bf16.msra.mxu0 %v6019_v30  ;;  %4482 = vmatpush1.bf16.msra.mxu1 %v6022_v31  ;;  %v6114_v30 = vld [vmem:[%s6889_s22 + $0x9ec] ss:$16 sps:$4 sm:$0xff]   ;;  %v895_v31 = vcombine.high %v7180_v19, %v7180_v19  ;;  %v6118_v19 = vld [vmem:[%s6889_s22 + $0xa08] ss:$16 sps:$4 sm:$0xff]  }
 0x176   : > { %4073 = vmatprep.subr.bf16.mxu0 %v6027_v32  ;;  %4483 = vmatprep.subr.bf16.mxu1 %v6030_v33  ;;  %v6109_v32 = vld [vmem:[%s6889_s22 + $0x9e0] ss:$16 sps:$4 sm:$0xff]   ;;  %v6112_v33 = vld [vmem:[%s6889_s22 + $0x9e8] ss:$16 sps:$4 sm:$0xff]  }
 0x177   : > { %4103 = vmatprep.mubr.bf16.mxu0 %v910_v22  ;;  %4513 = vmatprep.mubr.bf16.mxu1 %v910_v22  ;;  %v6117_v22 = vld [vmem:[%s6889_s22 + $0xa04] ss:$16 sps:$4 sm:$0xff]  }
 0x179   : > { %4074 = vmatpush1.bf16.msra.mxu0 %v6025_v34  ;;  %4484 = vmatpush1.bf16.msra.mxu1 %v6028_v35  ;;  %v6120_v34 = vld [vmem:[%s6889_s22 + $0xa0c] ss:$16 sps:$4 sm:$0xff]   ;;  %v7260_v35 = vrot.slane %v895_v31, %v6942_v49 }
 0x17a   : > { %4075 = vmatprep.subr.bf16.mxu0 %v6033_v36  ;;  %4485 = vmatprep.subr.bf16.mxu1 %v6036_v37  ;;  %v6115_v36 = vld [vmem:[%s6889_s22 + $0xa00] ss:$16 sps:$4 sm:$0xff]   ;;  %v6123_v37 = vld [vmem:[%s6889_s22 + $0xa24] ss:$16 sps:$4 sm:$0xff]   ;;  %v6204_v31 = vld [vmem:[%s6889_s22 + $0xbcc] ss:$16 sps:$4 sm:$0xff]  }
 0x17d   : > { %4076 = vmatpush1.bf16.msra.mxu0 %v6031_v38  ;;  %4486 = vmatpush1.bf16.msra.mxu1 %v6034_v25  ;;  %v6126_v38 = vld [vmem:[%s6889_s22 + $0xa2c] ss:$16 sps:$4 sm:$0xff]   ;;  %v911_v25 = vcombine.high %v7260_v35, %v7260_v35 }
 0x17e   : > { %4077 = vmatprep.subr.bf16.mxu0 %v6039_v39  ;;  %4487 = vmatprep.subr.bf16.mxu1 %v6042_v40  ;;  %v6121_v39 = vld [vmem:[%s6889_s22 + $0xa20] ss:$16 sps:$4 sm:$0xff]   ;;  %v6124_v40 = vld [vmem:[%s6889_s22 + $0xa28] ss:$16 sps:$4 sm:$0xff]  }
 0x181   : > { %4078 = vmatpush1.bf16.msra.mxu0 %v6037_v41  ;;  %4488 = vmatpush1.bf16.msra.mxu1 %v6040_v43  ;;  %v6129_v41 = vld [vmem:[%s6889_s22 + $0xa44] ss:$16 sps:$4 sm:$0xff]   ;;  %v6132_v43 = vld [vmem:[%s6889_s22 + $0xa4c] ss:$16 sps:$4 sm:$0xff]  }
 0x182   : > { %4079 = vmatprep.subr.bf16.mxu0 %v6045_v44  ;;  %4489 = vmatprep.subr.bf16.mxu1 %v6048_v45  ;;  %v6127_v44 = vld [vmem:[%s6889_s22 + $0xa40] ss:$16 sps:$4 sm:$0xff]   ;;  %v6135_v45 = vld [vmem:[%s6889_s22 + $0xa64] ss:$16 sps:$4 sm:$0xff]  }
 0x185   : > { %4080 = vmatpush1.bf16.msra.mxu0 %v6043_v46  ;;  %4490 = vmatpush1.bf16.msra.mxu1 %v6046_v47  ;;  %v6138_v46 = vld [vmem:[%s6889_s22 + $0xa6c] ss:$16 sps:$4 sm:$0xff]   ;;  %v6133_v47 = vld [vmem:[%s6889_s22 + $0xa60] ss:$16 sps:$4 sm:$0xff]  }
 0x186   : > { %4081 = vmatprep.subr.bf16.mxu0 %v6051_v48  ;;  %4491 = vmatprep.subr.bf16.mxu1 %v6054_v50  ;;  %v6136_v48 = vld [vmem:[%s6889_s22 + $0xa68] ss:$16 sps:$4 sm:$0xff]   ;;  %v6141_v50 = vld [vmem:[%s6889_s22 + $0xa84] ss:$16 sps:$4 sm:$0xff]  }
 0x189   : > { %4082 = vmatpush1.bf16.msra.mxu0 %v6049_v51  ;;  %4492 = vmatpush1.bf16.msra.mxu1 %v6052_v52  ;;  %v6144_v51 = vld [vmem:[%s6889_s22 + $0xa8c] ss:$16 sps:$4 sm:$0xff]   ;;  %v6139_v52 = vld [vmem:[%s6889_s22 + $0xa80] ss:$16 sps:$4 sm:$0xff]  }
 0x18a   : > { %4083 = vmatprep.subr.bf16.mxu0 %v6057_v53  ;;  %4493 = vmatprep.subr.bf16.mxu1 %v6060_v54  ;;  %v6142_v53 = vld [vmem:[%s6889_s22 + $0xa88] ss:$16 sps:$4 sm:$0xff]   ;;  %v6147_v54 = vld [vmem:[%s6889_s22 + $0xaa4] ss:$16 sps:$4 sm:$0xff]  }
 0x18d   : > { %4084 = vmatpush1.bf16.msra.mxu0 %v6055_v55  ;;  %4494 = vmatpush1.bf16.msra.mxu1 %v6058_v56  ;;  %v6150_v55 = vld [vmem:[%s6889_s22 + $0xaac] ss:$16 sps:$4 sm:$0xff]   ;;  %v6145_v56 = vld [vmem:[%s6889_s22 + $0xaa0] ss:$16 sps:$4 sm:$0xff]  }
 0x18e   : > { %4085 = vmatprep.subr.bf16.mxu0 %v6063_v57  ;;  %4495 = vmatprep.subr.bf16.mxu1 %v6066_v58  ;;  %v6148_v57 = vld [vmem:[%s6889_s22 + $0xaa8] ss:$16 sps:$4 sm:$0xff]   ;;  %v6153_v58 = vld [vmem:[%s6889_s22 + $0xac4] ss:$16 sps:$4 sm:$0xff]  }
 0x191   : > { %4086 = vmatpush1.bf16.msra.mxu0 %v6061_v59  ;;  %4496 = vmatpush1.bf16.msra.mxu1 %v6064_v60  ;;  %v6156_v59 = vld [vmem:[%s6889_s22 + $0xacc] ss:$16 sps:$4 sm:$0xff]   ;;  %v6151_v60 = vld [vmem:[%s6889_s22 + $0xac0] ss:$16 sps:$4 sm:$0xff]  }
 0x192   : > { %4087 = vmatprep.subr.bf16.mxu0 %v6069_v61  ;;  %4497 = vmatprep.subr.bf16.mxu1 %v6072_v62  ;;  %v6154_v61 = vld [vmem:[%s6889_s22 + $0xac8] ss:$16 sps:$4 sm:$0xff]   ;;  %v6159_v62 = vld [vmem:[%s6889_s22 + $0xae4] ss:$16 sps:$4 sm:$0xff]  }
 0x195   : > { %4088 = vmatpush1.bf16.msra.mxu0 %v6067_v63  ;;  %4498 = vmatpush1.bf16.msra.mxu1 %v6070_v0  ;;  %v6162_v63 = vld [vmem:[%s6889_s22 + $0xaec] ss:$16 sps:$4 sm:$0xff]   ;;  %v6157_v0 = vld [vmem:[%s6889_s22 + $0xae0] ss:$16 sps:$4 sm:$0xff]  }
 0x196   : > { %4089 = vmatprep.subr.bf16.mxu0 %v6075_v1  ;;  %4499 = vmatprep.subr.bf16.mxu1 %v6078_v2  ;;  %v6160_v1 = vld [vmem:[%s6889_s22 + $0xae8] ss:$16 sps:$4 sm:$0xff]   ;;  %v6165_v2 = vld [vmem:[%s6889_s22 + $0xb04] ss:$16 sps:$4 sm:$0xff]  }
 0x199   : > { %4090 = vmatpush1.bf16.msra.mxu0 %v6073_v3  ;;  %4500 = vmatpush1.bf16.msra.mxu1 %v6076_v4  ;;  %v6168_v3 = vld [vmem:[%s6889_s22 + $0xb0c] ss:$16 sps:$4 sm:$0xff]   ;;  %v6163_v4 = vld [vmem:[%s6889_s22 + $0xb00] ss:$16 sps:$4 sm:$0xff]  }
 0x19a   : > { %4091 = vmatprep.subr.bf16.mxu0 %v6081_v5  ;;  %4501 = vmatprep.subr.bf16.mxu1 %v6084_v6  ;;  %v6166_v5 = vld [vmem:[%s6889_s22 + $0xb08] ss:$16 sps:$4 sm:$0xff]   ;;  %v6171_v6 = vld [vmem:[%s6889_s22 + $0xb24] ss:$16 sps:$4 sm:$0xff]  }
 0x19d   : > { %4092 = vmatpush1.bf16.msra.mxu0 %v6079_v7  ;;  %4502 = vmatpush1.bf16.msra.mxu1 %v6082_v8  ;;  %v6174_v7 = vld [vmem:[%s6889_s22 + $0xb2c] ss:$16 sps:$4 sm:$0xff]   ;;  %v6169_v8 = vld [vmem:[%s6889_s22 + $0xb20] ss:$16 sps:$4 sm:$0xff]  }
 0x19e   : > { %4093 = vmatprep.subr.bf16.mxu0 %v6087_v9  ;;  %4503 = vmatprep.subr.bf16.mxu1 %v6090_v10  ;;  %v6172_v9 = vld [vmem:[%s6889_s22 + $0xb28] ss:$16 sps:$4 sm:$0xff]   ;;  %v6177_v10 = vld [vmem:[%s6889_s22 + $0xb44] ss:$16 sps:$4 sm:$0xff]  }
 0x1a1   : > { %4094 = vmatpush1.bf16.msra.mxu0 %v6085_v11  ;;  %4504 = vmatpush1.bf16.msra.mxu1 %v6088_v13  ;;  %v6180_v11 = vld [vmem:[%s6889_s22 + $0xb4c] ss:$16 sps:$4 sm:$0xff]   ;;  %v6175_v13 = vld [vmem:[%s6889_s22 + $0xb40] ss:$16 sps:$4 sm:$0xff]  }
 0x1a2   : > { %4095 = vmatprep.subr.bf16.mxu0 %v6093_v14  ;;  %4505 = vmatprep.subr.bf16.mxu1 %v6096_v15  ;;  %v6178_v14 = vld [vmem:[%s6889_s22 + $0xb48] ss:$16 sps:$4 sm:$0xff]   ;;  %v6183_v15 = vld [vmem:[%s6889_s22 + $0xb64] ss:$16 sps:$4 sm:$0xff]  }
 0x1a5   : > { %4096 = vmatpush1.bf16.msra.mxu0 %v6091_v16  ;;  %4506 = vmatpush1.bf16.msra.mxu1 %v6094_v17  ;;  %v6186_v16 = vld [vmem:[%s6889_s22 + $0xb6c] ss:$16 sps:$4 sm:$0xff]   ;;  %v6181_v17 = vld [vmem:[%s6889_s22 + $0xb60] ss:$16 sps:$4 sm:$0xff]  }
 0x1a6   : > { %4097 = vmatprep.subr.bf16.mxu0 %v6099_v18  ;;  %4507 = vmatprep.subr.bf16.mxu1 %v6102_v20  ;;  %v6184_v18 = vld [vmem:[%s6889_s22 + $0xb68] ss:$16 sps:$4 sm:$0xff]   ;;  %v6189_v20 = vld [vmem:[%s6889_s22 + $0xb84] ss:$16 sps:$4 sm:$0xff]  }
 0x1a9   : > { %4098 = vmatpush1.bf16.msra.mxu0 %v6097_v21  ;;  %4508 = vmatpush1.bf16.msra.mxu1 %v6100_v23  ;;  %v6192_v21 = vld [vmem:[%s6889_s22 + $0xb8c] ss:$16 sps:$4 sm:$0xff]   ;;  %v6187_v23 = vld [vmem:[%s6889_s22 + $0xb80] ss:$16 sps:$4 sm:$0xff]  }
 0x1aa   : > { %4099 = vmatprep.subr.bf16.mxu0 %v6105_v24  ;;  %4509 = vmatprep.subr.bf16.mxu1 %v6108_v26  ;;  %v6190_v24 = vld [vmem:[%s6889_s22 + $0xb88] ss:$16 sps:$4 sm:$0xff]   ;;  %v6195_v26 = vld [vmem:[%s6889_s22 + $0xba4] ss:$16 sps:$4 sm:$0xff]  }
 0x1ad   : > { %4100 = vmatpush1.bf16.msra.mxu0 %v6103_v27  ;;  %4510 = vmatpush1.bf16.msra.mxu1 %v6106_v12  ;;  %v6198_v27 = vld [vmem:[%s6889_s22 + $0xbac] ss:$16 sps:$4 sm:$0xff]   ;;  %v6193_v12 = vld [vmem:[%s6889_s22 + $0xba0] ss:$16 sps:$4 sm:$0xff]  }
 0x1ae   : > { %4101 = vmatprep.subr.bf16.mxu0 %v6111_v28  ;;  %4511 = vmatprep.subr.bf16.mxu1 %v6114_v30  ;;  %v6196_v28 = vld [vmem:[%s6889_s22 + $0xba8] ss:$16 sps:$4 sm:$0xff]   ;;  %v6201_v30 = vld [vmem:[%s6889_s22 + $0xbc4] ss:$16 sps:$4 sm:$0xff]  }
 0x1b1   : > { %4102 = vmatpush1.bf16.msra.mxu0 %v6109_v32  ;;  %4512 = vmatpush1.bf16.msra.mxu1 %v6112_v33  ;;  %v6199_v32 = vld [vmem:[%s6889_s22 + $0xbc0] ss:$16 sps:$4 sm:$0xff]   ;;  %v6202_v33 = vld [vmem:[%s6889_s22 + $0xbc8] ss:$16 sps:$4 sm:$0xff]  }
 0x1b2   : > { %4112 = vmatprep.subr.bf16.mxu0 %v6117_v22  ;;  %4522 = vmatprep.subr.bf16.mxu1 %v6120_v34  ;;  %v6207_v22 = vld [vmem:[%s6889_s22 + $0xbe4] ss:$16 sps:$4 sm:$0xff]   ;;  %v6210_v34 = vld [vmem:[%s6889_s22 + $0xbec] ss:$16 sps:$4 sm:$0xff]  }
 0x1b4   : > { %4104 = vmatmul.mubr.bf16.vlgmr.msra.gmra.mrb[0].mxu0 %v7187_v29  ;;  %4514 = vmatmul.mubr.bf16.vlgmr.msra.gmra.mrb[0].mxu1 %v7187_v29  ;;  %v6130_v29 = vld [vmem:[%s6889_s22 + $0xa48] ss:$16 sps:$4 sm:$0xff]  }
 0x1b5   : > { %4113 = vmatpush1.bf16.msra.mxu0 %v6115_v36  ;;  %4523 = vmatpush1.bf16.msra.mxu1 %v6118_v19  ;;  %v7326_v36 = vld [vmem:[#allocation2 + $0x18] sm:$0xff] }
 0x1b6   : > { %4114 = vmatprep.subr.bf16.mxu0 %v6123_v37  ;;  %4524 = vmatprep.subr.bf16.mxu1 %v6126_v38  ;;  %v6205_v19 = vld [vmem:[%s6889_s22 + $0xbe0] ss:$16 sps:$4 sm:$0xff]   ;;  %v6208_v37 = vld [vmem:[%s6889_s22 + $0xbe8] ss:$16 sps:$4 sm:$0xff]   ;;  %v6214_v38 = vld [vmem:[%s6889_s22 + $0xc04] ss:$16 sps:$4 sm:$0xff]  }
 0x1b7   : > { %4144 = vmatprep.mubr.bf16.mxu0 %v911_v25  ;;  %4554 = vmatprep.mubr.bf16.mxu1 %v911_v25  ;;  %v6217_v25 = vld [vmem:[%s6889_s22 + $0xc0c] ss:$16 sps:$4 sm:$0xff]  }
 0x1b9   : > { %4115 = vmatpush1.bf16.msra.mxu0 %v6121_v39  ;;  %4525 = vmatpush1.bf16.msra.mxu1 %v6124_v40  ;;  %v7334_v39 = vrot.slane %v7326_v36, %v6942_v49  ;;  %v6212_v40 = vld [vmem:[%s6889_s22 + $0xc00] ss:$16 sps:$4 sm:$0xff]  }
 0x1ba   : > { %4116 = vmatprep.subr.bf16.mxu0 %v6129_v41  ;;  %4526 = vmatprep.subr.bf16.mxu1 %v6132_v43  ;;  %v6215_v41 = vld [vmem:[%s6889_s22 + $0xc08] ss:$16 sps:$4 sm:$0xff]   ;;  %v6220_v43 = vld [vmem:[%s6889_s22 + $0xc24] ss:$16 sps:$4 sm:$0xff]  }
 0x1bd   : > { %4117 = vmatpush1.bf16.msra.mxu0 %v6127_v44  ;;  %4527 = vmatpush1.bf16.msra.mxu1 %v6130_v29  ;;  %v6223_v44 = vld [vmem:[%s6889_s22 + $0xc2c] ss:$16 sps:$4 sm:$0xff]   ;;  %v927_v29 = vcombine.high %v7334_v39, %v7334_v39 }
 0x1be   : > { %4118 = vmatprep.subr.bf16.mxu0 %v6135_v45  ;;  %4528 = vmatprep.subr.bf16.mxu1 %v6138_v46  ;;  %v6218_v45 = vld [vmem:[%s6889_s22 + $0xc20] ss:$16 sps:$4 sm:$0xff]   ;;  %v6221_v46 = vld [vmem:[%s6889_s22 + $0xc28] ss:$16 sps:$4 sm:$0xff]  }
 0x1c1   : > { %4119 = vmatpush1.bf16.msra.mxu0 %v6133_v47  ;;  %4529 = vmatpush1.bf16.msra.mxu1 %v6136_v48  ;;  %v6226_v47 = vld [vmem:[%s6889_s22 + $0xc44] ss:$16 sps:$4 sm:$0xff]   ;;  %v6229_v48 = vld [vmem:[%s6889_s22 + $0xc4c] ss:$16 sps:$4 sm:$0xff]  }
 0x1c2   : > { %4120 = vmatprep.subr.bf16.mxu0 %v6141_v50  ;;  %4530 = vmatprep.subr.bf16.mxu1 %v6144_v51  ;;  %v6224_v50 = vld [vmem:[%s6889_s22 + $0xc40] ss:$16 sps:$4 sm:$0xff]   ;;  %v6232_v51 = vld [vmem:[%s6889_s22 + $0xc64] ss:$16 sps:$4 sm:$0xff]  }
 0x1c5   : > { %4121 = vmatpush1.bf16.msra.mxu0 %v6139_v52  ;;  %4531 = vmatpush1.bf16.msra.mxu1 %v6142_v53  ;;  %v6235_v52 = vld [vmem:[%s6889_s22 + $0xc6c] ss:$16 sps:$4 sm:$0xff]   ;;  %v6230_v53 = vld [vmem:[%s6889_s22 + $0xc60] ss:$16 sps:$4 sm:$0xff]  }
 0x1c6   : > { %4122 = vmatprep.subr.bf16.mxu0 %v6147_v54  ;;  %4532 = vmatprep.subr.bf16.mxu1 %v6150_v55  ;;  %v6233_v54 = vld [vmem:[%s6889_s22 + $0xc68] ss:$16 sps:$4 sm:$0xff]   ;;  %v6238_v55 = vld [vmem:[%s6889_s22 + $0xc84] ss:$16 sps:$4 sm:$0xff]  }
 0x1c9   : > { %4123 = vmatpush1.bf16.msra.mxu0 %v6145_v56  ;;  %4533 = vmatpush1.bf16.msra.mxu1 %v6148_v57  ;;  %v6241_v56 = vld [vmem:[%s6889_s22 + $0xc8c] ss:$16 sps:$4 sm:$0xff]   ;;  %v6236_v57 = vld [vmem:[%s6889_s22 + $0xc80] ss:$16 sps:$4 sm:$0xff]  }
 0x1ca   : > { %4124 = vmatprep.subr.bf16.mxu0 %v6153_v58  ;;  %4534 = vmatprep.subr.bf16.mxu1 %v6156_v59  ;;  %v6239_v58 = vld [vmem:[%s6889_s22 + $0xc88] ss:$16 sps:$4 sm:$0xff]   ;;  %v6244_v59 = vld [vmem:[%s6889_s22 + $0xca4] ss:$16 sps:$4 sm:$0xff]  }
 0x1cd   : > { %4125 = vmatpush1.bf16.msra.mxu0 %v6151_v60  ;;  %4535 = vmatpush1.bf16.msra.mxu1 %v6154_v61  ;;  %v6247_v60 = vld [vmem:[%s6889_s22 + $0xcac] ss:$16 sps:$4 sm:$0xff]   ;;  %v6242_v61 = vld [vmem:[%s6889_s22 + $0xca0] ss:$16 sps:$4 sm:$0xff]  }
 0x1ce   : > { %4126 = vmatprep.subr.bf16.mxu0 %v6159_v62  ;;  %4536 = vmatprep.subr.bf16.mxu1 %v6162_v63  ;;  %v6245_v62 = vld [vmem:[%s6889_s22 + $0xca8] ss:$16 sps:$4 sm:$0xff]   ;;  %v6250_v63 = vld [vmem:[%s6889_s22 + $0xcc4] ss:$16 sps:$4 sm:$0xff]  }
 0x1d1   : > { %4127 = vmatpush1.bf16.msra.mxu0 %v6157_v0  ;;  %4537 = vmatpush1.bf16.msra.mxu1 %v6160_v1  ;;  %v6253_v0 = vld [vmem:[%s6889_s22 + $0xccc] ss:$16 sps:$4 sm:$0xff]   ;;  %v6248_v1 = vld [vmem:[%s6889_s22 + $0xcc0] ss:$16 sps:$4 sm:$0xff]  }
 0x1d2   : > { %4128 = vmatprep.subr.bf16.mxu0 %v6165_v2  ;;  %4538 = vmatprep.subr.bf16.mxu1 %v6168_v3  ;;  %v6251_v2 = vld [vmem:[%s6889_s22 + $0xcc8] ss:$16 sps:$4 sm:$0xff]   ;;  %v6256_v3 = vld [vmem:[%s6889_s22 + $0xce4] ss:$16 sps:$4 sm:$0xff]  }
 0x1d5   : > { %4129 = vmatpush1.bf16.msra.mxu0 %v6163_v4  ;;  %4539 = vmatpush1.bf16.msra.mxu1 %v6166_v5  ;;  %v6259_v4 = vld [vmem:[%s6889_s22 + $0xcec] ss:$16 sps:$4 sm:$0xff]   ;;  %v6254_v5 = vld [vmem:[%s6889_s22 + $0xce0] ss:$16 sps:$4 sm:$0xff]  }
 0x1d6   : > { %4130 = vmatprep.subr.bf16.mxu0 %v6171_v6  ;;  %4540 = vmatprep.subr.bf16.mxu1 %v6174_v7  ;;  %v6257_v6 = vld [vmem:[%s6889_s22 + $0xce8] ss:$16 sps:$4 sm:$0xff]   ;;  %v6262_v7 = vld [vmem:[%s6889_s22 + $0xd04] ss:$16 sps:$4 sm:$0xff]  }
 0x1d9   : > { %4131 = vmatpush1.bf16.msra.mxu0 %v6169_v8  ;;  %4541 = vmatpush1.bf16.msra.mxu1 %v6172_v9  ;;  %v6265_v8 = vld [vmem:[%s6889_s22 + $0xd0c] ss:$16 sps:$4 sm:$0xff]   ;;  %v6260_v9 = vld [vmem:[%s6889_s22 + $0xd00] ss:$16 sps:$4 sm:$0xff]  }
 0x1da   : > { %4132 = vmatprep.subr.bf16.mxu0 %v6177_v10  ;;  %4542 = vmatprep.subr.bf16.mxu1 %v6180_v11  ;;  %v6263_v10 = vld [vmem:[%s6889_s22 + $0xd08] ss:$16 sps:$4 sm:$0xff]   ;;  %v6268_v11 = vld [vmem:[%s6889_s22 + $0xd24] ss:$16 sps:$4 sm:$0xff]  }
 0x1dd   : > { %4133 = vmatpush1.bf16.msra.mxu0 %v6175_v13  ;;  %4543 = vmatpush1.bf16.msra.mxu1 %v6178_v14  ;;  %v6271_v13 = vld [vmem:[%s6889_s22 + $0xd2c] ss:$16 sps:$4 sm:$0xff]   ;;  %v6266_v14 = vld [vmem:[%s6889_s22 + $0xd20] ss:$16 sps:$4 sm:$0xff]  }
 0x1de   : > { %4134 = vmatprep.subr.bf16.mxu0 %v6183_v15  ;;  %4544 = vmatprep.subr.bf16.mxu1 %v6186_v16  ;;  %v6269_v15 = vld [vmem:[%s6889_s22 + $0xd28] ss:$16 sps:$4 sm:$0xff]   ;;  %v6274_v16 = vld [vmem:[%s6889_s22 + $0xd44] ss:$16 sps:$4 sm:$0xff]  }
 0x1e1   : > { %4135 = vmatpush1.bf16.msra.mxu0 %v6181_v17  ;;  %4545 = vmatpush1.bf16.msra.mxu1 %v6184_v18  ;;  %v6277_v17 = vld [vmem:[%s6889_s22 + $0xd4c] ss:$16 sps:$4 sm:$0xff]   ;;  %v6272_v18 = vld [vmem:[%s6889_s22 + $0xd40] ss:$16 sps:$4 sm:$0xff]  }
 0x1e2   : > { %4136 = vmatprep.subr.bf16.mxu0 %v6189_v20  ;;  %4546 = vmatprep.subr.bf16.mxu1 %v6192_v21  ;;  %v6275_v20 = vld [vmem:[%s6889_s22 + $0xd48] ss:$16 sps:$4 sm:$0xff]   ;;  %v6280_v21 = vld [vmem:[%s6889_s22 + $0xd64] ss:$16 sps:$4 sm:$0xff]  }
 0x1e5   : > { %4137 = vmatpush1.bf16.msra.mxu0 %v6187_v23  ;;  %4547 = vmatpush1.bf16.msra.mxu1 %v6190_v24  ;;  %v6283_v23 = vld [vmem:[%s6889_s22 + $0xd6c] ss:$16 sps:$4 sm:$0xff]   ;;  %v6278_v24 = vld [vmem:[%s6889_s22 + $0xd60] ss:$16 sps:$4 sm:$0xff]  }
 0x1e6   : > { %4138 = vmatprep.subr.bf16.mxu0 %v6195_v26  ;;  %4548 = vmatprep.subr.bf16.mxu1 %v6198_v27  ;;  %v6281_v26 = vld [vmem:[%s6889_s22 + $0xd68] ss:$16 sps:$4 sm:$0xff]   ;;  %v6286_v27 = vld [vmem:[%s6889_s22 + $0xd84] ss:$16 sps:$4 sm:$0xff]  }
 0x1e9   : > { %4139 = vmatpush1.bf16.msra.mxu0 %v6193_v12  ;;  %4549 = vmatpush1.bf16.msra.mxu1 %v6196_v28  ;;  %v6289_v12 = vld [vmem:[%s6889_s22 + $0xd8c] ss:$16 sps:$4 sm:$0xff]   ;;  %v6284_v28 = vld [vmem:[%s6889_s22 + $0xd80] ss:$16 sps:$4 sm:$0xff]  }
 0x1ea   : > { %4140 = vmatprep.subr.bf16.mxu0 %v6201_v30  ;;  %4550 = vmatprep.subr.bf16.mxu1 %v6204_v31  ;;  %v6287_v30 = vld [vmem:[%s6889_s22 + $0xd88] ss:$16 sps:$4 sm:$0xff]   ;;  %v6292_v31 = vld [vmem:[%s6889_s22 + $0xda4] ss:$16 sps:$4 sm:$0xff]  }
 0x1ed   : > { %4141 = vmatpush1.bf16.msra.mxu0 %v6199_v32  ;;  %4551 = vmatpush1.bf16.msra.mxu1 %v6202_v33  ;;  %v6295_v32 = vld [vmem:[%s6889_s22 + $0xdac] ss:$16 sps:$4 sm:$0xff]   ;;  %v6290_v33 = vld [vmem:[%s6889_s22 + $0xda0] ss:$16 sps:$4 sm:$0xff]  }
 0x1ee   : > { %4142 = vmatprep.subr.bf16.mxu0 %v6207_v22  ;;  %4552 = vmatprep.subr.bf16.mxu1 %v6210_v34  ;;  %v6293_v22 = vld [vmem:[%s6889_s22 + $0xda8] ss:$16 sps:$4 sm:$0xff]   ;;  %v6298_v34 = vld [vmem:[%s6889_s22 + $0xdc4] ss:$16 sps:$4 sm:$0xff]  }
 0x1f1   : > { %4143 = vmatpush1.bf16.msra.mxu0 %v6205_v19  ;;  %4553 = vmatpush1.bf16.msra.mxu1 %v6208_v37  ;;  %v6301_v19 = vld [vmem:[%s6889_s22 + $0xdcc] ss:$16 sps:$4 sm:$0xff]   ;;  %v6296_v37 = vld [vmem:[%s6889_s22 + $0xdc0] ss:$16 sps:$4 sm:$0xff]  }
 0x1f2   : > { %4153 = vmatprep.subr.bf16.mxu0 %v6214_v38  ;;  %4563 = vmatprep.subr.bf16.mxu1 %v6217_v25  ;;  %v6299_v38 = vld [vmem:[%s6889_s22 + $0xdc8] ss:$16 sps:$4 sm:$0xff]   ;;  %v6304_v25 = vld [vmem:[%s6889_s22 + $0xde4] ss:$16 sps:$4 sm:$0xff]  }
 0x1f4   : > { %4145 = vmatmul.mubr.bf16.vlgmr.msra.gmra.mrb[0].mxu0 %v7260_v35  ;;  %4555 = vmatmul.mubr.bf16.vlgmr.msra.gmra.mrb[0].mxu1 %v7260_v35  ;;  %v6227_v35 = vld [vmem:[%s6889_s22 + $0xc48] ss:$16 sps:$4 sm:$0xff]  }
 0x1f5   : > { %4154 = vmatpush1.bf16.msra.mxu0 %v6212_v40  ;;  %4564 = vmatpush1.bf16.msra.mxu1 %v6215_v41  ;;  %v6307_v40 = vld [vmem:[%s6889_s22 + $0xdec] ss:$16 sps:$4 sm:$0xff]   ;;  %v912_v41 = vcombine.high %v7326_v36, %v7326_v36  ;;  %v6311_v36 = vld [vmem:[%s6889_s22 + $0xe08] ss:$16 sps:$4 sm:$0xff]  }
 0x1f6   : > { %4155 = vmatprep.subr.bf16.mxu0 %v6220_v43  ;;  %4565 = vmatprep.subr.bf16.mxu1 %v6223_v44  ;;  %v6302_v43 = vld [vmem:[%s6889_s22 + $0xde0] ss:$16 sps:$4 sm:$0xff]   ;;  %v6305_v44 = vld [vmem:[%s6889_s22 + $0xde8] ss:$16 sps:$4 sm:$0xff]  }
 0x1f7   : > { %4185 = vmatprep.mubr.bf16.mxu0 %v927_v29  ;;  %4595 = vmatprep.mubr.bf16.mxu1 %v927_v29  ;;  %v6310_v29 = vld [vmem:[%s6889_s22 + $0xe04] ss:$16 sps:$4 sm:$0xff]  }
 0x1f9   : > { %4156 = vmatpush1.bf16.msra.mxu0 %v6218_v45  ;;  %4566 = vmatpush1.bf16.msra.mxu1 %v6221_v46  ;;  %v6313_v45 = vld [vmem:[%s6889_s22 + $0xe0c] ss:$16 sps:$4 sm:$0xff]   ;;  %v7407_v46 = vrot.slane %v912_v41, %v6942_v49 }
 0x1fa   : > { %4157 = vmatprep.subr.bf16.mxu0 %v6226_v47  ;;  %4567 = vmatprep.subr.bf16.mxu1 %v6229_v48  ;;  %v6308_v47 = vld [vmem:[%s6889_s22 + $0xe00] ss:$16 sps:$4 sm:$0xff]   ;;  %v6316_v48 = vld [vmem:[%s6889_s22 + $0xe24] ss:$16 sps:$4 sm:$0xff]   ;;  %v6397_v41 = vld [vmem:[%s6889_s22 + $0xfcc] ss:$16 sps:$4 sm:$0xff]  }
 0x1fd   : > { %4158 = vmatpush1.bf16.msra.mxu0 %v6224_v50  ;;  %4568 = vmatpush1.bf16.msra.mxu1 %v6227_v35  ;;  %v6319_v50 = vld [vmem:[%s6889_s22 + $0xe2c] ss:$16 sps:$4 sm:$0xff]   ;;  %v928_v35 = vcombine.high %v7407_v46, %v7407_v46 }
 0x1fe   : > { %4159 = vmatprep.subr.bf16.mxu0 %v6232_v51  ;;  %4569 = vmatprep.subr.bf16.mxu1 %v6235_v52  ;;  %v6314_v51 = vld [vmem:[%s6889_s22 + $0xe20] ss:$16 sps:$4 sm:$0xff]   ;;  %v6317_v52 = vld [vmem:[%s6889_s22 + $0xe28] ss:$16 sps:$4 sm:$0xff]  }
 0x201   : > { %4160 = vmatpush1.bf16.msra.mxu0 %v6230_v53  ;;  %4570 = vmatpush1.bf16.msra.mxu1 %v6233_v54  ;;  %v6322_v53 = vld [vmem:[%s6889_s22 + $0xe44] ss:$16 sps:$4 sm:$0xff]   ;;  %v6325_v54 = vld [vmem:[%s6889_s22 + $0xe4c] ss:$16 sps:$4 sm:$0xff]  }
 0x202   : > { %4161 = vmatprep.subr.bf16.mxu0 %v6238_v55  ;;  %4571 = vmatprep.subr.bf16.mxu1 %v6241_v56  ;;  %v6320_v55 = vld [vmem:[%s6889_s22 + $0xe40] ss:$16 sps:$4 sm:$0xff]   ;;  %v6328_v56 = vld [vmem:[%s6889_s22 + $0xe64] ss:$16 sps:$4 sm:$0xff]  }
 0x205   : > { %4162 = vmatpush1.bf16.msra.mxu0 %v6236_v57  ;;  %4572 = vmatpush1.bf16.msra.mxu1 %v6239_v58  ;;  %v6331_v57 = vld [vmem:[%s6889_s22 + $0xe6c] ss:$16 sps:$4 sm:$0xff]   ;;  %v6326_v58 = vld [vmem:[%s6889_s22 + $0xe60] ss:$16 sps:$4 sm:$0xff]  }
 0x206   : > { %4163 = vmatprep.subr.bf16.mxu0 %v6244_v59  ;;  %4573 = vmatprep.subr.bf16.mxu1 %v6247_v60  ;;  %v6329_v59 = vld [vmem:[%s6889_s22 + $0xe68] ss:$16 sps:$4 sm:$0xff]   ;;  %v6334_v60 = vld [vmem:[%s6889_s22 + $0xe84] ss:$16 sps:$4 sm:$0xff]  }
 0x209   : > { %4164 = vmatpush1.bf16.msra.mxu0 %v6242_v61  ;;  %4574 = vmatpush1.bf16.msra.mxu1 %v6245_v62  ;;  %v6337_v61 = vld [vmem:[%s6889_s22 + $0xe8c] ss:$16 sps:$4 sm:$0xff]   ;;  %v6332_v62 = vld [vmem:[%s6889_s22 + $0xe80] ss:$16 sps:$4 sm:$0xff]  }
 0x20a   : > { %4165 = vmatprep.subr.bf16.mxu0 %v6250_v63  ;;  %4575 = vmatprep.subr.bf16.mxu1 %v6253_v0  ;;  %v6335_v63 = vld [vmem:[%s6889_s22 + $0xe88] ss:$16 sps:$4 sm:$0xff]   ;;  %v6340_v0 = vld [vmem:[%s6889_s22 + $0xea4] ss:$16 sps:$4 sm:$0xff]  }
 0x20d   : > { %4166 = vmatpush1.bf16.msra.mxu0 %v6248_v1  ;;  %4576 = vmatpush1.bf16.msra.mxu1 %v6251_v2  ;;  %v6343_v1 = vld [vmem:[%s6889_s22 + $0xeac] ss:$16 sps:$4 sm:$0xff]   ;;  %v6338_v2 = vld [vmem:[%s6889_s22 + $0xea0] ss:$16 sps:$4 sm:$0xff]  }
 0x20e   : > { %4167 = vmatprep.subr.bf16.mxu0 %v6256_v3  ;;  %4577 = vmatprep.subr.bf16.mxu1 %v6259_v4  ;;  %v6341_v3 = vld [vmem:[%s6889_s22 + $0xea8] ss:$16 sps:$4 sm:$0xff]   ;;  %v6346_v4 = vld [vmem:[%s6889_s22 + $0xec4] ss:$16 sps:$4 sm:$0xff]  }
 0x211   : > { %4168 = vmatpush1.bf16.msra.mxu0 %v6254_v5  ;;  %4578 = vmatpush1.bf16.msra.mxu1 %v6257_v6  ;;  %v6349_v5 = vld [vmem:[%s6889_s22 + $0xecc] ss:$16 sps:$4 sm:$0xff]   ;;  %v6344_v6 = vld [vmem:[%s6889_s22 + $0xec0] ss:$16 sps:$4 sm:$0xff]  }
 0x212   : > { %4169 = vmatprep.subr.bf16.mxu0 %v6262_v7  ;;  %4579 = vmatprep.subr.bf16.mxu1 %v6265_v8  ;;  %v6347_v7 = vld [vmem:[%s6889_s22 + $0xec8] ss:$16 sps:$4 sm:$0xff]   ;;  %v6352_v8 = vld [vmem:[%s6889_s22 + $0xee4] ss:$16 sps:$4 sm:$0xff]  }
 0x215   : > { %4170 = vmatpush1.bf16.msra.mxu0 %v6260_v9  ;;  %4580 = vmatpush1.bf16.msra.mxu1 %v6263_v10  ;;  %v6355_v9 = vld [vmem:[%s6889_s22 + $0xeec] ss:$16 sps:$4 sm:$0xff]   ;;  %v6350_v10 = vld [vmem:[%s6889_s22 + $0xee0] ss:$16 sps:$4 sm:$0xff]  }
 0x216   : > { %4171 = vmatprep.subr.bf16.mxu0 %v6268_v11  ;;  %4581 = vmatprep.subr.bf16.mxu1 %v6271_v13  ;;  %v6353_v11 = vld [vmem:[%s6889_s22 + $0xee8] ss:$16 sps:$4 sm:$0xff]   ;;  %v6358_v13 = vld [vmem:[%s6889_s22 + $0xf04] ss:$16 sps:$4 sm:$0xff]  }
 0x219   : > { %4172 = vmatpush1.bf16.msra.mxu0 %v6266_v14  ;;  %4582 = vmatpush1.bf16.msra.mxu1 %v6269_v15  ;;  %v6361_v14 = vld [vmem:[%s6889_s22 + $0xf0c] ss:$16 sps:$4 sm:$0xff]   ;;  %v6356_v15 = vld [vmem:[%s6889_s22 + $0xf00] ss:$16 sps:$4 sm:$0xff]  }
 0x21a   : > { %4173 = vmatprep.subr.bf16.mxu0 %v6274_v16  ;;  %4583 = vmatprep.subr.bf16.mxu1 %v6277_v17  ;;  %v6359_v16 = vld [vmem:[%s6889_s22 + $0xf08] ss:$16 sps:$4 sm:$0xff]   ;;  %v6364_v17 = vld [vmem:[%s6889_s22 + $0xf24] ss:$16 sps:$4 sm:$0xff]  }
 0x21d   : > { %4174 = vmatpush1.bf16.msra.mxu0 %v6272_v18  ;;  %4584 = vmatpush1.bf16.msra.mxu1 %v6275_v20  ;;  %v6367_v18 = vld [vmem:[%s6889_s22 + $0xf2c] ss:$16 sps:$4 sm:$0xff]   ;;  %v6362_v20 = vld [vmem:[%s6889_s22 + $0xf20] ss:$16 sps:$4 sm:$0xff]  }
 0x21e   : > { %4175 = vmatprep.subr.bf16.mxu0 %v6280_v21  ;;  %4585 = vmatprep.subr.bf16.mxu1 %v6283_v23  ;;  %v6365_v21 = vld [vmem:[%s6889_s22 + $0xf28] ss:$16 sps:$4 sm:$0xff]   ;;  %v6370_v23 = vld [vmem:[%s6889_s22 + $0xf44] ss:$16 sps:$4 sm:$0xff]  }
 0x221   : > { %4176 = vmatpush1.bf16.msra.mxu0 %v6278_v24  ;;  %4586 = vmatpush1.bf16.msra.mxu1 %v6281_v26  ;;  %v6373_v24 = vld [vmem:[%s6889_s22 + $0xf4c] ss:$16 sps:$4 sm:$0xff]   ;;  %v6368_v26 = vld [vmem:[%s6889_s22 + $0xf40] ss:$16 sps:$4 sm:$0xff]  }
 0x222   : > { %4177 = vmatprep.subr.bf16.mxu0 %v6286_v27  ;;  %4587 = vmatprep.subr.bf16.mxu1 %v6289_v12  ;;  %v6371_v27 = vld [vmem:[%s6889_s22 + $0xf48] ss:$16 sps:$4 sm:$0xff]   ;;  %v6376_v12 = vld [vmem:[%s6889_s22 + $0xf64] ss:$16 sps:$4 sm:$0xff]  }
 0x225   : > { %4178 = vmatpush1.bf16.msra.mxu0 %v6284_v28  ;;  %4588 = vmatpush1.bf16.msra.mxu1 %v6287_v30  ;;  %v6379_v28 = vld [vmem:[%s6889_s22 + $0xf6c] ss:$16 sps:$4 sm:$0xff]   ;;  %v6374_v30 = vld [vmem:[%s6889_s22 + $0xf60] ss:$16 sps:$4 sm:$0xff]  }
 0x226   : > { %4179 = vmatprep.subr.bf16.mxu0 %v6292_v31  ;;  %4589 = vmatprep.subr.bf16.mxu1 %v6295_v32  ;;  %v6377_v31 = vld [vmem:[%s6889_s22 + $0xf68] ss:$16 sps:$4 sm:$0xff]   ;;  %v6382_v32 = vld [vmem:[%s6889_s22 + $0xf84] ss:$16 sps:$4 sm:$0xff]  }
 0x229   : > { %4180 = vmatpush1.bf16.msra.mxu0 %v6290_v33  ;;  %4590 = vmatpush1.bf16.msra.mxu1 %v6293_v22  ;;  %v6385_v33 = vld [vmem:[%s6889_s22 + $0xf8c] ss:$16 sps:$4 sm:$0xff]   ;;  %v6380_v22 = vld [vmem:[%s6889_s22 + $0xf80] ss:$16 sps:$4 sm:$0xff]  }
 0x22a   : > { %4181 = vmatprep.subr.bf16.mxu0 %v6298_v34  ;;  %4591 = vmatprep.subr.bf16.mxu1 %v6301_v19  ;;  %v6383_v34 = vld [vmem:[%s6889_s22 + $0xf88] ss:$16 sps:$4 sm:$0xff]   ;;  %v6388_v19 = vld [vmem:[%s6889_s22 + $0xfa4] ss:$16 sps:$4 sm:$0xff]  }
 0x22d   : > { %4182 = vmatpush1.bf16.msra.mxu0 %v6296_v37  ;;  %4592 = vmatpush1.bf16.msra.mxu1 %v6299_v38  ;;  %v6391_v37 = vld [vmem:[%s6889_s22 + $0xfac] ss:$16 sps:$4 sm:$0xff]   ;;  %v6386_v38 = vld [vmem:[%s6889_s22 + $0xfa0] ss:$16 sps:$4 sm:$0xff]  }
 0x22e   : > { %4183 = vmatprep.subr.bf16.mxu0 %v6304_v25  ;;  %4593 = vmatprep.subr.bf16.mxu1 %v6307_v40  ;;  %v6389_v25 = vld [vmem:[%s6889_s22 + $0xfa8] ss:$16 sps:$4 sm:$0xff]   ;;  %v6394_v40 = vld [vmem:[%s6889_s22 + $0xfc4] ss:$16 sps:$4 sm:$0xff]  }
 0x231   : > { %4184 = vmatpush1.bf16.msra.mxu0 %v6302_v43  ;;  %4594 = vmatpush1.bf16.msra.mxu1 %v6305_v44  ;;  %v6392_v43 = vld [vmem:[%s6889_s22 + $0xfc0] ss:$16 sps:$4 sm:$0xff]   ;;  %v6395_v44 = vld [vmem:[%s6889_s22 + $0xfc8] ss:$16 sps:$4 sm:$0xff]  }
 0x232   : > { %4194 = vmatprep.subr.bf16.mxu0 %v6310_v29  ;;  %4604 = vmatprep.subr.bf16.mxu1 %v6313_v45  ;;  %v6400_v29 = vld [vmem:[%s6889_s22 + $0xfe4] ss:$16 sps:$4 sm:$0xff]   ;;  %v6403_v45 = vld [vmem:[%s6889_s22 + $0xfec] ss:$16 sps:$4 sm:$0xff]  }
 0x234   : > { %4186 = vmatmul.mubr.bf16.vlgmr.msra.gmra.mrb[0].mxu0 %v7334_v39  ;;  %4596 = vmatmul.mubr.bf16.vlgmr.msra.gmra.mrb[0].mxu1 %v7334_v39  ;;  %v6323_v39 = vld [vmem:[%s6889_s22 + $0xe48] ss:$16 sps:$4 sm:$0xff]  }
 0x235   : > { %4195 = vmatpush1.bf16.msra.mxu0 %v6308_v47  ;;  %4605 = vmatpush1.bf16.msra.mxu1 %v6311_v36  ;;  %v7473_v47 = vld [vmem:[#allocation2 + $0x20] sm:$0x3f]  ;;  %v6398_v36 = vld [vmem:[%s6889_s22 + $0xfe0] ss:$16 sps:$4 sm:$0xff]  }
 0x236   : > { %4196 = vmatprep.subr.bf16.mxu0 %v6316_v48  ;;  %4606 = vmatprep.subr.bf16.mxu1 %v6319_v50  ;;  %v6401_v48 = vld [vmem:[%s6889_s22 + $0xfe8] ss:$16 sps:$4 sm:$0xff]   ;;  %v6407_v50 = vld [vmem:[%s6889_s22 + $0x1004] ss:$16 sps:$4 sm:$0xff]  }
 0x237   : > { %4226 = vmatprep.mubr.bf16.mxu0 %v928_v35  ;;  %4636 = vmatprep.mubr.bf16.mxu1 %v928_v35  ;;  %v6410_v35 = vld [vmem:[%s6889_s22 + $0x100c] ss:$16 sps:$4 sm:$0xff]  }
 0x239   : > { %4197 = vmatpush1.bf16.msra.mxu0 %v6314_v51  ;;  %4607 = vmatpush1.bf16.msra.mxu1 %v6317_v52  ;;  %v7481_v51 = vrot.slane %v7473_v47, %v6942_v49  ;;  %v6405_v52 = vld [vmem:[%s6889_s22 + $0x1000] ss:$16 sps:$4 sm:$0xff]  }
 0x23a   : > { %4198 = vmatprep.subr.bf16.mxu0 %v6322_v53  ;;  %4608 = vmatprep.subr.bf16.mxu1 %v6325_v54  ;;  %v6408_v53 = vld [vmem:[%s6889_s22 + $0x1008] ss:$16 sps:$4 sm:$0xff]   ;;  %v6413_v54 = vld [vmem:[%s6889_s22 + $0x1024] ss:$16 sps:$4 sm:$0xff]  }
 0x23d   : > { %4199 = vmatpush1.bf16.msra.mxu0 %v6320_v55  ;;  %4609 = vmatpush1.bf16.msra.mxu1 %v6323_v39  ;;  %v6416_v55 = vld [vmem:[%s6889_s22 + $0x102c] ss:$16 sps:$4 sm:$0xff]   ;;  %v944_v39 = vcombine.high %v7481_v51, %v7481_v51 }
 0x23e   : > { %4200 = vmatprep.subr.bf16.mxu0 %v6328_v56  ;;  %4610 = vmatprep.subr.bf16.mxu1 %v6331_v57  ;;  %v6411_v56 = vld [vmem:[%s6889_s22 + $0x1020] ss:$16 sps:$4 sm:$0xff]   ;;  %v6414_v57 = vld [vmem:[%s6889_s22 + $0x1028] ss:$16 sps:$4 sm:$0xff]  }
 0x241   : > { %4201 = vmatpush1.bf16.msra.mxu0 %v6326_v58  ;;  %4611 = vmatpush1.bf16.msra.mxu1 %v6329_v59  ;;  %v6419_v58 = vld [vmem:[%s6889_s22 + $0x1044] ss:$16 sps:$4 sm:$0xff]   ;;  %v6422_v59 = vld [vmem:[%s6889_s22 + $0x104c] ss:$16 sps:$4 sm:$0xff]  }
 0x242   : > { %4202 = vmatprep.subr.bf16.mxu0 %v6334_v60  ;;  %4612 = vmatprep.subr.bf16.mxu1 %v6337_v61  ;;  %v6417_v60 = vld [vmem:[%s6889_s22 + $0x1040] ss:$16 sps:$4 sm:$0xff]   ;;  %v6425_v61 = vld [vmem:[%s6889_s22 + $0x1064] ss:$16 sps:$4 sm:$0xff]  }
 0x245   : > { %4203 = vmatpush1.bf16.msra.mxu0 %v6332_v62  ;;  %4613 = vmatpush1.bf16.msra.mxu1 %v6335_v63  ;;  %v6428_v62 = vld [vmem:[%s6889_s22 + $0x106c] ss:$16 sps:$4 sm:$0xff]   ;;  %v6423_v63 = vld [vmem:[%s6889_s22 + $0x1060] ss:$16 sps:$4 sm:$0xff]  }
 0x246   : > { %4204 = vmatprep.subr.bf16.mxu0 %v6340_v0  ;;  %4614 = vmatprep.subr.bf16.mxu1 %v6343_v1  ;;  %v6426_v0 = vld [vmem:[%s6889_s22 + $0x1068] ss:$16 sps:$4 sm:$0xff]   ;;  %v6431_v1 = vld [vmem:[%s6889_s22 + $0x1084] ss:$16 sps:$4 sm:$0xff]  }
 0x249   : > { %4205 = vmatpush1.bf16.msra.mxu0 %v6338_v2  ;;  %4615 = vmatpush1.bf16.msra.mxu1 %v6341_v3  ;;  %v6434_v2 = vld [vmem:[%s6889_s22 + $0x108c] ss:$16 sps:$4 sm:$0xff]   ;;  %v6429_v3 = vld [vmem:[%s6889_s22 + $0x1080] ss:$16 sps:$4 sm:$0xff]  }
 0x24a   : > { %4206 = vmatprep.subr.bf16.mxu0 %v6346_v4  ;;  %4616 = vmatprep.subr.bf16.mxu1 %v6349_v5  ;;  %v6432_v4 = vld [vmem:[%s6889_s22 + $0x1088] ss:$16 sps:$4 sm:$0xff]   ;;  %v6437_v5 = vld [vmem:[%s6889_s22 + $0x10a4] ss:$16 sps:$4 sm:$0xff]  }
 0x24d   : > { %4207 = vmatpush1.bf16.msra.mxu0 %v6344_v6  ;;  %4617 = vmatpush1.bf16.msra.mxu1 %v6347_v7  ;;  %v6440_v6 = vld [vmem:[%s6889_s22 + $0x10ac] ss:$16 sps:$4 sm:$0xff]   ;;  %v6435_v7 = vld [vmem:[%s6889_s22 + $0x10a0] ss:$16 sps:$4 sm:$0xff]  }
 0x24e   : > { %4208 = vmatprep.subr.bf16.mxu0 %v6352_v8  ;;  %4618 = vmatprep.subr.bf16.mxu1 %v6355_v9  ;;  %v6438_v8 = vld [vmem:[%s6889_s22 + $0x10a8] ss:$16 sps:$4 sm:$0xff]   ;;  %v6443_v9 = vld [vmem:[%s6889_s22 + $0x10c4] ss:$16 sps:$4 sm:$0xff]  }
 0x251   : > { %4209 = vmatpush1.bf16.msra.mxu0 %v6350_v10  ;;  %4619 = vmatpush1.bf16.msra.mxu1 %v6353_v11  ;;  %v6446_v10 = vld [vmem:[%s6889_s22 + $0x10cc] ss:$16 sps:$4 sm:$0xff]   ;;  %v6441_v11 = vld [vmem:[%s6889_s22 + $0x10c0] ss:$16 sps:$4 sm:$0xff]  }
 0x252   : > { %4210 = vmatprep.subr.bf16.mxu0 %v6358_v13  ;;  %4620 = vmatprep.subr.bf16.mxu1 %v6361_v14  ;;  %v6444_v13 = vld [vmem:[%s6889_s22 + $0x10c8] ss:$16 sps:$4 sm:$0xff]   ;;  %v6449_v14 = vld [vmem:[%s6889_s22 + $0x10e4] ss:$16 sps:$4 sm:$0xff]  }
 0x255   : > { %4211 = vmatpush1.bf16.msra.mxu0 %v6356_v15  ;;  %4621 = vmatpush1.bf16.msra.mxu1 %v6359_v16  ;;  %v6452_v15 = vld [vmem:[%s6889_s22 + $0x10ec] ss:$16 sps:$4 sm:$0xff]   ;;  %v6447_v16 = vld [vmem:[%s6889_s22 + $0x10e0] ss:$16 sps:$4 sm:$0xff]  }
 0x256   : > { %4212 = vmatprep.subr.bf16.mxu0 %v6364_v17  ;;  %4622 = vmatprep.subr.bf16.mxu1 %v6367_v18  ;;  %v6450_v17 = vld [vmem:[%s6889_s22 + $0x10e8] ss:$16 sps:$4 sm:$0xff]   ;;  %v6455_v18 = vld [vmem:[%s6889_s22 + $0x1104] ss:$16 sps:$4 sm:$0xff]  }
 0x259   : > { %4213 = vmatpush1.bf16.msra.mxu0 %v6362_v20  ;;  %4623 = vmatpush1.bf16.msra.mxu1 %v6365_v21  ;;  %v6458_v20 = vld [vmem:[%s6889_s22 + $0x110c] ss:$16 sps:$4 sm:$0xff]   ;;  %v6453_v21 = vld [vmem:[%s6889_s22 + $0x1100] ss:$16 sps:$4 sm:$0xff]  }
 0x25a   : > { %4214 = vmatprep.subr.bf16.mxu0 %v6370_v23  ;;  %4624 = vmatprep.subr.bf16.mxu1 %v6373_v24  ;;  %v6456_v23 = vld [vmem:[%s6889_s22 + $0x1108] ss:$16 sps:$4 sm:$0xff]   ;;  %v6461_v24 = vld [vmem:[%s6889_s22 + $0x1124] ss:$16 sps:$4 sm:$0xff]  }
 0x25d   : > { %4215 = vmatpush1.bf16.msra.mxu0 %v6368_v26  ;;  %4625 = vmatpush1.bf16.msra.mxu1 %v6371_v27  ;;  %v6464_v26 = vld [vmem:[%s6889_s22 + $0x112c] ss:$16 sps:$4 sm:$0xff]   ;;  %v6459_v27 = vld [vmem:[%s6889_s22 + $0x1120] ss:$16 sps:$4 sm:$0xff]  }
 0x25e   : > { %4216 = vmatprep.subr.bf16.mxu0 %v6376_v12  ;;  %4626 = vmatprep.subr.bf16.mxu1 %v6379_v28  ;;  %v6462_v12 = vld [vmem:[%s6889_s22 + $0x1128] ss:$16 sps:$4 sm:$0xff]   ;;  %v6467_v28 = vld [vmem:[%s6889_s22 + $0x1144] ss:$16 sps:$4 sm:$0xff]  }
 0x261   : > { %4217 = vmatpush1.bf16.msra.mxu0 %v6374_v30  ;;  %4627 = vmatpush1.bf16.msra.mxu1 %v6377_v31  ;;  %v6470_v30 = vld [vmem:[%s6889_s22 + $0x114c] ss:$16 sps:$4 sm:$0xff]   ;;  %v6465_v31 = vld [vmem:[%s6889_s22 + $0x1140] ss:$16 sps:$4 sm:$0xff]  }
 0x262   : > { %4218 = vmatprep.subr.bf16.mxu0 %v6382_v32  ;;  %4628 = vmatprep.subr.bf16.mxu1 %v6385_v33  ;;  %v6468_v32 = vld [vmem:[%s6889_s22 + $0x1148] ss:$16 sps:$4 sm:$0xff]   ;;  %v6473_v33 = vld [vmem:[%s6889_s22 + $0x1164] ss:$16 sps:$4 sm:$0xff]  }
 0x265   : > { %4219 = vmatpush1.bf16.msra.mxu0 %v6380_v22  ;;  %4629 = vmatpush1.bf16.msra.mxu1 %v6383_v34  ;;  %v6476_v22 = vld [vmem:[%s6889_s22 + $0x116c] ss:$16 sps:$4 sm:$0xff]   ;;  %v6471_v34 = vld [vmem:[%s6889_s22 + $0x1160] ss:$16 sps:$4 sm:$0xff]  }
 0x266   : > { %4220 = vmatprep.subr.bf16.mxu0 %v6388_v19  ;;  %4630 = vmatprep.subr.bf16.mxu1 %v6391_v37  ;;  %v6474_v19 = vld [vmem:[%s6889_s22 + $0x1168] ss:$16 sps:$4 sm:$0xff]   ;;  %v6479_v37 = vld [vmem:[%s6889_s22 + $0x1184] ss:$16 sps:$4 sm:$0xff]  }
 0x269   : > { %4221 = vmatpush1.bf16.msra.mxu0 %v6386_v38  ;;  %4631 = vmatpush1.bf16.msra.mxu1 %v6389_v25  ;;  %v6482_v38 = vld [vmem:[%s6889_s22 + $0x118c] ss:$16 sps:$4 sm:$0xff]   ;;  %v6477_v25 = vld [vmem:[%s6889_s22 + $0x1180] ss:$16 sps:$4 sm:$0xff]  }
 0x26a   : > { %4222 = vmatprep.subr.bf16.mxu0 %v6394_v40  ;;  %4632 = vmatprep.subr.bf16.mxu1 %v6397_v41  ;;  %v6480_v40 = vld [vmem:[%s6889_s22 + $0x1188] ss:$16 sps:$4 sm:$0xff]   ;;  %v6485_v41 = vld [vmem:[%s6889_s22 + $0x11a4] ss:$16 sps:$4 sm:$0xff]  }
 0x26d   : > { %4223 = vmatpush1.bf16.msra.mxu0 %v6392_v43  ;;  %4633 = vmatpush1.bf16.msra.mxu1 %v6395_v44  ;;  %v6488_v43 = vld [vmem:[%s6889_s22 + $0x11ac] ss:$16 sps:$4 sm:$0xff]   ;;  %v6483_v44 = vld [vmem:[%s6889_s22 + $0x11a0] ss:$16 sps:$4 sm:$0xff]  }
 0x26e   : > { %4224 = vmatprep.subr.bf16.mxu0 %v6400_v29  ;;  %4634 = vmatprep.subr.bf16.mxu1 %v6403_v45  ;;  %v6486_v29 = vld [vmem:[%s6889_s22 + $0x11a8] ss:$16 sps:$4 sm:$0xff]   ;;  %v6491_v45 = vld [vmem:[%s6889_s22 + $0x11c4] ss:$16 sps:$4 sm:$0xff]  }
 0x271   : > { %4225 = vmatpush1.bf16.msra.mxu0 %v6398_v36  ;;  %4635 = vmatpush1.bf16.msra.mxu1 %v6401_v48  ;;  %v6494_v36 = vld [vmem:[%s6889_s22 + $0x11cc] ss:$16 sps:$4 sm:$0xff]   ;;  %v6489_v48 = vld [vmem:[%s6889_s22 + $0x11c0] ss:$16 sps:$4 sm:$0xff]  }
 0x272   : > { %4235 = vmatprep.subr.bf16.mxu0 %v6407_v50  ;;  %4645 = vmatprep.subr.bf16.mxu1 %v6410_v35  ;;  %v6492_v50 = vld [vmem:[%s6889_s22 + $0x11c8] ss:$16 sps:$4 sm:$0xff]   ;;  %v6497_v35 = vld [vmem:[%s6889_s22 + $0x11e4] ss:$16 sps:$4 sm:$0xff]  }
 0x274   : > { %4227 = vmatmul.mubr.bf16.vlgmr.msra.gmra.mrb[0].mxu0 %v7407_v46  ;;  %4637 = vmatmul.mubr.bf16.vlgmr.msra.gmra.mrb[0].mxu1 %v7407_v46  ;;  %v6420_v46 = vld [vmem:[%s6889_s22 + $0x1048] ss:$16 sps:$4 sm:$0xff]  }
 0x275   : > { %4236 = vmatpush1.bf16.msra.mxu0 %v6405_v52  ;;  %4646 = vmatpush1.bf16.msra.mxu1 %v6408_v53  ;;  %v6500_v52 = vld [vmem:[%s6889_s22 + $0x11ec] ss:$16 sps:$4 sm:$0xff]   ;;  %v6495_v53 = vld [vmem:[%s6889_s22 + $0x11e0] ss:$16 sps:$4 sm:$0xff]  }
 0x276   : > { %4237 = vmatprep.subr.bf16.mxu0 %v6413_v54  ;;  %4647 = vmatprep.subr.bf16.mxu1 %v6416_v55  ;;  %v6498_v54 = vld [vmem:[%s6889_s22 + $0x11e8] ss:$16 sps:$4 sm:$0xff]   ;;  %v6504_v55 = vld [vmem:[%s6889_s22 + $0x1204] ss:$16 sps:$4 sm:$0xff]  }
 0x277   : > { %4267 = vmatprep.mubr.bf16.mxu0 %v944_v39  ;;  %4677 = vmatprep.mubr.bf16.mxu1 %v944_v39  ;;  %v6507_v39 = vld [vmem:[%s6889_s22 + $0x120c] ss:$16 sps:$4 sm:$0xff]  }
 0x279   : > { %4238 = vmatpush1.bf16.msra.mxu0 %v6411_v56  ;;  %4648 = vmatpush1.bf16.msra.mxu1 %v6414_v57  ;;  %v6502_v56 = vld [vmem:[%s6889_s22 + $0x1200] ss:$16 sps:$4 sm:$0xff]   ;;  %v6505_v57 = vld [vmem:[%s6889_s22 + $0x1208] ss:$16 sps:$4 sm:$0xff]  }
 0x27a   : > { %4239 = vmatprep.subr.bf16.mxu0 %v6419_v58  ;;  %4649 = vmatprep.subr.bf16.mxu1 %v6422_v59  ;;  %v6510_v58 = vld [vmem:[%s6889_s22 + $0x1224] ss:$16 sps:$4 sm:$0xff]   ;;  %v6513_v59 = vld [vmem:[%s6889_s22 + $0x122c] ss:$16 sps:$4 sm:$0xff]  }
 0x27d   : > { %4240 = vmatpush1.bf16.msra.mxu0 %v6417_v60  ;;  %4650 = vmatpush1.bf16.msra.mxu1 %v6420_v46  ;;  %v6508_v60 = vld [vmem:[%s6889_s22 + $0x1220] ss:$16 sps:$4 sm:$0xff]   ;;  %v6511_v46 = vld [vmem:[%s6889_s22 + $0x1228] ss:$16 sps:$4 sm:$0xff]  }
 0x27e   : > { %4241 = vmatprep.subr.bf16.mxu0 %v6425_v61  ;;  %4651 = vmatprep.subr.bf16.mxu1 %v6428_v62  ;;  %v6516_v61 = vld [vmem:[%s6889_s22 + $0x1244] ss:$16 sps:$4 sm:$0xff]   ;;  %v6519_v62 = vld [vmem:[%s6889_s22 + $0x124c] ss:$16 sps:$4 sm:$0xff]  }
 0x281   : > { %4242 = vmatpush1.bf16.msra.mxu0 %v6423_v63  ;;  %4652 = vmatpush1.bf16.msra.mxu1 %v6426_v0  ;;  %v6687_v63 = vmov 0   ;;  %v929_v0 = vcombine.high %v7473_v47, %v7473_v47  ;;  %v834_v47 = vld [vmem:[%s209_s28] sm:$0xf] }
 0x282   : > { %4243 = vmatprep.subr.bf16.mxu0 %v6431_v1  ;;  %4653 = vmatprep.subr.bf16.mxu1 %v6434_v2  ;;  %v6514_v1 = vld [vmem:[%s6889_s22 + $0x1240] ss:$16 sps:$4 sm:$0xff]  }
 0x283   : > { %v943_v2 = vrot.slane %v929_v0, %v6942_v49 }
 0x285   : > { %4244 = vmatpush1.bf16.msra.mxu0 %v6429_v3  ;;  %4654 = vmatpush1.bf16.msra.mxu1 %v6432_v4  ;;  %v838_v3 = vsub.s32 0, %v6934_v42  ;;  %v846_v4 = vsub.s32 2, %v6934_v42 }
 0x286   : > { %4245 = vmatprep.subr.bf16.mxu0 %v6437_v5  ;;  %4655 = vmatprep.subr.bf16.mxu1 %v6440_v6  ;;  %v842_v5 = vsub.s32 1, %v6934_v42  ;;  %v850_v6 = vsub.s32 3, %v6934_v42 }
 0x289   : > { %4246 = vmatpush1.bf16.msra.mxu0 %v6435_v7  ;;  %4656 = vmatpush1.bf16.msra.mxu1 %v6438_v8  ;;  %v839_v7 = vrot.slane %v834_v47, %v838_v3  ;;  %v847_v8 = vrot.slane %v834_v47, %v846_v4 }
 0x28a   : > { %4247 = vmatprep.subr.bf16.mxu0 %v6443_v9  ;;  %4657 = vmatprep.subr.bf16.mxu1 %v6446_v10  ;;  %v843_v9 = vrot.slane %v834_v47, %v842_v5  ;;  %v851_v10 = vrot.slane %v834_v47, %v850_v6 }
 0x28d   : > { %4248 = vmatpush1.bf16.msra.mxu0 %v6441_v11  ;;  %4658 = vmatpush1.bf16.msra.mxu1 %v6444_v13 }
 0x28e   : > { %4249 = vmatprep.subr.bf16.mxu0 %v6449_v14  ;;  %4659 = vmatprep.subr.bf16.mxu1 %v6452_v15 }
 0x291   : > { %4250 = vmatpush1.bf16.msra.mxu0 %v6447_v16  ;;  %4660 = vmatpush1.bf16.msra.mxu1 %v6450_v17 }
 0x292   : > { %4251 = vmatprep.subr.bf16.mxu0 %v6455_v18  ;;  %4661 = vmatprep.subr.bf16.mxu1 %v6458_v20 }
 0x295   : > { %4252 = vmatpush1.bf16.msra.mxu0 %v6453_v21  ;;  %4662 = vmatpush1.bf16.msra.mxu1 %v6456_v23 }
 0x296   : > { %4253 = vmatprep.subr.bf16.mxu0 %v6461_v24  ;;  %4663 = vmatprep.subr.bf16.mxu1 %v6464_v26 }
 0x299   : > { %4254 = vmatpush1.bf16.msra.mxu0 %v6459_v27  ;;  %4664 = vmatpush1.bf16.msra.mxu1 %v6462_v12 }
 0x29a   : > { %4255 = vmatprep.subr.bf16.mxu0 %v6467_v28  ;;  %4665 = vmatprep.subr.bf16.mxu1 %v6470_v30 }
 0x29d   : > { %4256 = vmatpush1.bf16.msra.mxu0 %v6465_v31  ;;  %4666 = vmatpush1.bf16.msra.mxu1 %v6468_v32 }
 0x29e   : > { %4257 = vmatprep.subr.bf16.mxu0 %v6473_v33  ;;  %4667 = vmatprep.subr.bf16.mxu1 %v6476_v22 }
 0x2a1   : > { %4258 = vmatpush1.bf16.msra.mxu0 %v6471_v34  ;;  %4668 = vmatpush1.bf16.msra.mxu1 %v6474_v19 }
 0x2a2   : > { %4259 = vmatprep.subr.bf16.mxu0 %v6479_v37  ;;  %4669 = vmatprep.subr.bf16.mxu1 %v6482_v38 }
 0x2a5   : > { %4260 = vmatpush1.bf16.msra.mxu0 %v6477_v25  ;;  %4670 = vmatpush1.bf16.msra.mxu1 %v6480_v40 }
 0x2a6   : > { %4261 = vmatprep.subr.bf16.mxu0 %v6485_v41  ;;  %4671 = vmatprep.subr.bf16.mxu1 %v6488_v43 }
 0x2a9   : > { %4262 = vmatpush1.bf16.msra.mxu0 %v6483_v44  ;;  %4672 = vmatpush1.bf16.msra.mxu1 %v6486_v29 }
 0x2aa   : > { %4263 = vmatprep.subr.bf16.mxu0 %v6491_v45  ;;  %4673 = vmatprep.subr.bf16.mxu1 %v6494_v36 }
 0x2ad   : > { %4264 = vmatpush1.bf16.msra.mxu0 %v6489_v48  ;;  %4674 = vmatpush1.bf16.msra.mxu1 %v6492_v50 }
 0x2ae   : > { %4265 = vmatprep.subr.bf16.mxu0 %v6497_v35  ;;  %4675 = vmatprep.subr.bf16.mxu1 %v6500_v52 }
 0x2b1   : > { %4266 = vmatpush1.bf16.msra.mxu0 %v6495_v53  ;;  %4676 = vmatpush1.bf16.msra.mxu1 %v6498_v54 }
 0x2b2   : > { %4276 = vmatprep.subr.bf16.mxu0 %v6504_v55  ;;  %4686 = vmatprep.subr.bf16.mxu1 %v6507_v39 }
 0x2b4   : > { %4268 = vmatmul.mubr.bf16.vlgmr.msra.gmra.mrb[0].mxu0 %v7481_v51  ;;  %4678 = vmatmul.mubr.bf16.vlgmr.msra.gmra.mrb[0].mxu1 %v7481_v51  ;;  %v6517_v51 = vld [vmem:[%s6889_s22 + $0x1248] ss:$16 sps:$4 sm:$0xff]  }
 0x2b5   : > { %4277 = vmatpush1.bf16.msra.mxu0 %v6502_v56  ;;  %4687 = vmatpush1.bf16.msra.mxu1 %v6505_v57 }
 0x2b6   : > { %4278 = vmatprep.subr.bf16.mxu0 %v6510_v58  ;;  %4688 = vmatprep.subr.bf16.mxu1 %v6513_v59 }
 0x2b7   : > { %4308 = vmatprep.mubr.bf16.mxu0 %v6687_v63  ;;  %4718 = vmatprep.mubr.bf16.mxu1 %v6687_v63 }
 0x2b9   : > { %4279 = vmatpush1.bf16.msra.mxu0 %v6508_v60  ;;  %4689 = vmatpush1.bf16.msra.mxu1 %v6511_v46 }
 0x2ba   : > { %4280 = vmatprep.subr.bf16.mxu0 %v6516_v61  ;;  %4690 = vmatprep.subr.bf16.mxu1 %v6519_v62 }
 0x2bd   : > { %4281 = vmatpush1.bf16.msra.mxu0 %v6514_v1  ;;  %4691 = vmatpush1.bf16.msra.mxu1 %v6517_v51 }
 0x2c0   : > { %5476 = vmatmul.mubr.msk.bf16.vlgmr.msra.gmra.mrb[0].mxu0 %vm3903_vm0, %v943_v2  ;;  %5477 = vmatmul.mubr.msk.bf16.vlgmr.msra.gmra.mrb[0].mxu1 %vm3903_vm0, %v943_v2 }
 0x393   : > { %v4310_v11 = vpop.f32.mrb[0].mxu0  ;;  %v4720_v13 = vpop.f32.mrb[0].mxu1 }
 0x394   : > { %v5488_v14 = vadd.f32 %v4310_v11, %v839_v7  ;;  %v5490_v15 = vadd.f32 %v4720_v13, %v847_v8  ;;  %v4312_v16 = vpop.f32.mrb[1].mxu0  ;;  %v4722_v17 = vpop.f32.mrb[1].mxu1 }
 0x395   : > { %v5489_v18 = vadd.f32 %v4312_v16, %v843_v9  ;;  %v5491_v20 = vadd.f32 %v4722_v17, %v851_v10  ;;  %v4314_v21 = vpop.f32.mrb[2].mxu0  ;;  %v4724_v23 = vpop.f32.mrb[2].mxu1 }
 0x396   : > { %v4727_v24 = vmax.f32 %v5488_v14, 0.0  ;;  %v4729_v26 = vmax.f32 %v5490_v15, 0.0  ;;  %v4315_v42 = vpop.f32.mrb[3].mxu0  ;;  %v4725_v27 = vpop.f32.mrb[3].mxu1 }
 0x397   : > { %v4728_v12 = vmax.f32 %v5489_v18, 0.0  ;;  %v4730_v28 = vmax.f32 %v5491_v20, 0.0 }
 0x399   : > { %v5478_v30 = vpack.c.bf16 %v4728_v12, %v4727_v24  ;;  %v5479_v31 = vpack.c.bf16 %v4730_v28, %v4729_v26 }
 0x39b   : > { %v4747_v32 = vrot.slane %v5478_v30, %v6942_v49  ;;  %v4754_v33 = vrot.slane %v5479_v31, %v6942_v49 }
 0x39d   : > { %v4755_v22 = vcombine.low %v4747_v32, %v4754_v33 }
 0x39f   : > { %4757 = vst [vmem:[%s236_s20] sm:$0xff] %v4755_v22 }
 0x3a0   : > { %6621 = shalt.err (!%p6618_p1)
}
 0x3a1   : > { %s6622_s17 = scalar_lea.hbm %s7578_s5, 128  ;;  %s6626_s21 = scalar_lea.hbm %s7624_s3, 384 }
 0x3a2   : > { %p6623_p5 = scmp.ne.s32.totalorder %s7578_s5, %s6622_s17  ;;  %p6627_p6 = scmp.lt.u32.totalorder %s7578_s5, %s7624_s3 }
 0x3a3   : > { %p6628_p8 = scmp.lt.u32.totalorder %s6626_s21, %s6622_s17  ;;  %p6630_p11 = scmp.lt.u32.totalorder %s6622_s17, %s7578_s5 }
 0x3a4   : > { %p6624_p4 = pnand %p6623_p5, %p7645_p3 }
 0x3a5   : > { %p6629_p13 = por %p6628_p8, %p6627_p6 }
 0x3a6   : > { %p6625_p2 = pneg %p6624_p4 }
 0x3a7   : > { %p6631_p0 = por %p6630_p11, %p6629_p13 }
 0x3a9   : > { %p6632_p10 = pnand %p6631_p0, %p6625_p2 }
 0x3ab   : > { %6635 = shalt.err (!%p6632_p10)
}
 0x3ac   : > { %5574 = dma.vmem_to_hbm [thread:$0]  (%p7645_p3), %s7580_s23, 128, %s7578_s5, %s4759_s6  }
 0x3ad PF: > { %p5594_p12 = scmp.ge.s32.totalorder %s6678_s15, 2  ;;  %s4785_s28 = sand.u32 1, %s6666_s12  }
 0x3ae   : > { %p7646_p9 = scmp.ne.s32.totalorder %s7635_s29, 0  ;;  %s4786_s4 = scalar_lea.sflag [#allocation4], %s4785_s28 }
 0x3b0   : > { %p5588_p7 = pnand %p5594_p12, %p7646_p9 }
 0x3b2   : > { %6661 = dma.done.wait (!%p5588_p7), %s4786_s4, 128  }
 0x3b3   : > { %6663 = vsyncadd (!%p5588_p7), %s4786_s4, 4294967168  ;;  %p17_p1 = scmp.ge.s32.totalorder %s6730_s16, 5   ;;  %s7647_s12 = smov %s6670_s13 }
 0x3b4   : > { %s7648_s13 = smov %s6674_s14  ;;  %s7649_s14 = smov %s6740_s19 }
 0x3b5   : > { %s7650_s15 = smov %s6730_s16  ;;  %19 = sbr.rel (!%p17_p1) target bundleno = 6 (0x6), region = 93 }
 0x3bc   :  { %4791 = vsyncpa [#allocation3], 1 }
 0x3bd   :  { %4793 = vsyncpa [#allocation3 + $0x1], 1 }
 0x3be   :  { %4794 = vsyncpa [#allocation6], 1 }
 0x3bf   :  { %4796 = vsyncpa [#allocation6 + $0x1], 1 }
 0x3c0   :  { %4797 = vsyncpa [#allocation4], 1 }
 0x3c1   :  { %4799 = vsyncpa [#allocation4 + $0x1], 1 }

</bundles_post_ra>
